<compile_context>
chip_gen: v7x
topology: tpu7x:2x2x1
jax: 0.10.0
libtpu: 0.0.40
codegen_flags: <defaults>
</compile_context>

<pallas_src>
import jax
import jax.numpy as jnp
import numpy as np
from jax.experimental import pallas as pl
from jax.experimental.pallas import tpu as pltpu

EPS = 1e-5                        # PyTorch BatchNorm default eps
MXU_WEIGHT_DTYPE = jnp.bfloat16   # storage dtype of the fused LSTM gate weight (DMA /2)
MXU_OPERAND_DTYPE = jnp.float32   # set to jnp.bfloat16 on v6e/v7x for single-pass bf16
                                  # MXU (then loosen the check tolerances to ~2e-3/5e-3)


def _sigmoid(x):                  # explicit formula, identical in kernel and reference
    return 1.0 / (1.0 + jnp.exp(-x))


# ------------------------------------------------------------------------------------
# Fused kernel
# ------------------------------------------------------------------------------------
def fused_kernel(scal_ref, x_ref, wcat_ref, pslab_ref, hc_ref, slab_ref):
    B, C, S = x_ref.shape
    LN = hc_ref.shape[1]                     # 4 * lstm_hidden == 128 lanes
    Hl = LN // 4
    Cr = (wcat_ref.shape[0] - LN) // S       # reduced conv channels

    # ---- 1x1 conv on the VPU: Cr*C scalar-times-vector FMAs (weights in SMEM) -------
    x = x_ref[...]                           # (B, C, S), spatial on the lane axis
    xs = [x[:, c, :] for c in range(C)]      # C full-lane (B, S) slabs
    inv_n = 1.0 / float(B * S)
    ys = []
    for r in range(Cr):
        acc = scal_ref[r * C] * xs[0]
        for c in range(1, C):
            acc = acc + scal_ref[r * C + c] * xs[c]
        # BatchNorm2d (training-mode stats over (B, H*W), two-pass for stability) + ReLU.
        # Conv bias omitted: exactly cancelled by the batch-mean subtraction.
        mean = jnp.sum(jnp.sum(acc, axis=1, keepdims=True), axis=0, keepdims=True) * inv_n
        d = acc - mean
        var = jnp.sum(jnp.sum(d * d, axis=1, keepdims=True), axis=0, keepdims=True) * inv_n
        y = d * jax.lax.rsqrt(var + EPS) * scal_ref[Cr * C + r] + scal_ref[Cr * C + Cr + r]
        ys.append(jnp.maximum(y, 0.0))

    # ---- LSTM step: ONE fused MXU matmul over [y0 | y1 | h0 | c0 | 0pad] ------------
    # w_cat rows: [W_ih^T (Cr*S) ; W_hh^T (Hl) ; zeros (LN-Hl)] -> c0/pad lanes give 0.
    feat = jnp.concatenate(ys + [hc_ref[...]], axis=-1)        # (B, Cr*S + LN)
    gates = jnp.dot(feat.astype(MXU_OPERAND_DTYPE),
                    wcat_ref[...].astype(MXU_OPERAND_DTYPE),
                    preferred_element_type=jnp.float32) + pslab_ref[0:1, :]   # (B, 4Hl)

    # gate order i, f, g, o; full-width activations (2 EUP pushes + one lane select)
    lane = jax.lax.broadcasted_iota(jnp.int32, gates.shape, 1)
    is_g = (lane >= 2 * Hl) & (lane < 3 * Hl)
    acts = jnp.where(is_g, jnp.tanh(gates), _sigmoid(gates))

    # c1 / h1 computed directly in their output-slab lane positions with XLU rolls:
    #   acts   = [ i | f | g | o ],  hc = [ h0 | c0 | 0 | 0 ]
    #   roll+H = [ o | i | f | g ],  roll-H = [ f | g | o | i ]
    acts_p = pltpu.roll(acts, Hl, axis=1)            # shift by +Hl
    acts_m = pltpu.roll(acts, 3 * Hl, axis=1)        # == shift by -Hl
    c1_full = acts * hc_ref[...] + acts_p * acts_m             # lanes [Hl:2Hl] = f*c0+i*g
    h1_full = acts_p * jnp.tanh(pltpu.roll(c1_full, 3 * Hl, axis=1))  # lanes [0:Hl] = o*tanh(c1)

    # ---- BN1d -> ReLU -> Linear -> BN1d -> ReLU -> Linear (lane-padded to 128) ------
    # Pad gammas/betas and pad weight rows/cols are zero, so the garbage lanes of
    # h1_full never reach real outputs.  First fc bias omitted (cancelled by its BN).
    def bn1d(v, gamma, beta):                        # per-lane batch stats, two-pass
        m = jnp.mean(v, axis=0, keepdims=True)
        d = v - m
        var = jnp.mean(d * d, axis=0, keepdims=True)
        return d * jax.lax.rsqrt(var + EPS) * gamma + beta

    z = jnp.maximum(bn1d(h1_full, pslab_ref[1:2, :], pslab_ref[2:3, :]), 0.0)
    z = jnp.dot(z, pslab_ref[8:8 + LN, :], preferred_element_type=jnp.float32)
    z = jnp.maximum(bn1d(z, pslab_ref[3:4, :], pslab_ref[4:5, :]), 0.0)
    logits = jnp.dot(z, pslab_ref[8 + LN:8 + 2 * LN, :],
                     preferred_element_type=jnp.float32) + pslab_ref[5:6, :]

    # ---- lane-dense output slab: [ h1 | c1 | support logits (zero-padded) ] ---------
    out_lane = jax.lax.broadcasted_iota(jnp.int32, logits.shape, 1)
    slab_ref[...] = jnp.where(out_lane < Hl, h1_full,
                              jnp.where(out_lane < 2 * Hl, c1_full, logits))


# ------------------------------------------------------------------------------------
# Parameter packing: 16 logical tensors -> 3 kernel-facing refs
# ------------------------------------------------------------------------------------
def pack_params(params, cfg):
    C, Cr = cfg["num_channels"], cfg["reduced_channels"]
    S, Hl = cfg["spatial"], cfg["lstm_hidden_size"]
    FC, Sup = cfg["fc_hidden"], cfg["output_support_size"]
    LN = 4 * Hl
    assert LN == 128, "kernel packing assumes 4*lstm_hidden_size == 128 lanes"
    assert 2 * Hl + Sup <= LN, "h1|c1|logits must fit one 128-lane slab"
    assert Hl <= LN and FC <= LN

    # SMEM scalar pack: [conv_w (Cr*C) | bn2d_gamma (Cr) | bn2d_beta (Cr)], padded to 16
    scal = jnp.concatenate([params["conv_w"].reshape(-1),
                            params["bn2d_g"].reshape(-1),
                            params["bn2d_b"].reshape(-1)]).astype(jnp.float32)
    scal = jnp.pad(scal, (0, 16 - scal.shape[0]))

    # fused gate weight: rows [W_ih^T (Cr*S) ; W_hh^T (Hl) ; zeros (LN - Hl)]
    w_cat = jnp.concatenate(
        [params["w_ih_T"], params["w_hh_T"],
         jnp.zeros((LN - Hl, LN), params["w_ih_T"].dtype)], axis=0)

    # parameter slab (f32, one DMA): 8 vector rows + lane-padded fc weights
    def row(vals, start):
        v = jnp.asarray(vals, jnp.float32).reshape(-1)
        return jnp.zeros((1, LN), jnp.float32).at[0, start:start + v.shape[0]].set(v)

    rows = jnp.concatenate([
        row(params["b_gates"], 0),         # row 0: b_ih + b_hh
        row(params["bn1_g"], 0),           # row 1
        row(params["bn1_b"], 0),           # row 2
        row(params["bn2_g"], 0),           # row 3
        row(params["bn2_b"], 0),           # row 4
        row(params["b2"], 2 * Hl),         # row 5: final bias at its slab lanes
        jnp.zeros((2, LN), jnp.float32),   # rows 6-7: pad (keeps w1/w2 tile-aligned)
    ], axis=0)
    w1_pad = jnp.zeros((LN, LN), jnp.float32).at[:Hl, :FC].set(params["w1_T"])
    w2_pad = jnp.zeros((LN, LN), jnp.float32).at[:FC, 2 * Hl:2 * Hl + Sup].set(params["w2_T"])
    pslab = jnp.concatenate([rows, w1_pad, w2_pad], axis=0)    # (8 + 2*128, 128)
    return {"scal": scal, "w_cat": w_cat, "pslab": pslab}


# ------------------------------------------------------------------------------------
# Forward wrapper (pure glue: free NCHW reshape, hc slab build, pallas_call, slicing)
# ------------------------------------------------------------------------------------
def support_lstm_forward(x, hidden, packed, cfg):
    B, C, H, W = x.shape
    S = H * W
    Hl = cfg["lstm_hidden_size"]
    Sup = cfg["output_support_size"]
    LN = 4 * Hl

    h0, c0 = hidden                                   # each (1, B, Hl), PyTorch layout
    hc = jnp.concatenate([h0[0], c0[0],
                          jnp.zeros((B, LN - 2 * Hl), jnp.float32)], axis=-1)

    # advisory cost estimate so XLA can schedule/overlap this tiny custom call
    flops = 2 * B * (cfg["reduced_channels"] * C * S
                     + packed["w_cat"].shape[0] * LN + 2 * LN * LN)
    bytes_acc = sum(int(a.size) * a.dtype.itemsize
                    for a in (packed["scal"], packed["w_cat"], packed["pslab"], hc))
    bytes_acc += B * C * S * 4 + B * LN * 4
    cost = pl.CostEstimate(flops=int(flops), transcendentals=int(3 * B * LN),
                           bytes_accessed=int(bytes_acc))

    slab = pl.pallas_call(
        fused_kernel,
        out_shape=jax.ShapeDtypeStruct((B, LN), jnp.float32),
        in_specs=[
            pl.BlockSpec(memory_space=pltpu.MemorySpace.SMEM),   # packed scalars
            pl.BlockSpec(memory_space=pltpu.MemorySpace.VMEM),   # x (B, C, H*W)
            pl.BlockSpec(memory_space=pltpu.MemorySpace.VMEM),   # fused gate weight
            pl.BlockSpec(memory_space=pltpu.MemorySpace.VMEM),   # parameter slab
            pl.BlockSpec(memory_space=pltpu.MemorySpace.VMEM),   # [h0 | c0 | 0]
        ],
        out_specs=pl.BlockSpec(memory_space=pltpu.MemorySpace.VMEM),
        cost_estimate=cost,
        # TODO(synk): in a recurrent rollout, alias the hc slab to the output slab via
        #             input_output_aliases (h/c lanes already line up) or carry h/c in
        #             VMEM scratch over a time grid axis.
    )(packed["scal"], x.reshape(B, C, S), packed["w_cat"], packed["pslab"], hc)

    h1 = slab[:, :Hl]
    c1 = slab[:, Hl:2 * Hl]
    out = slab[:, 2 * Hl:2 * Hl + Sup]
    return out, (h1[None], c1[None])


# ------------------------------------------------------------------------------------
# Pure-JAX reference: faithful PyTorch math (keeps conv/fc biases, same weight values)
# ------------------------------------------------------------------------------------
def reference_forward(x, hidden, params, cfg):
    B, C, H, W = x.shape
    S = H * W
    Cr = cfg["reduced_channels"]
    Hl = cfg["lstm_hidden_size"]

    def bn(v, g, b, axes):                            # two-pass training-mode batch stats
        m = jnp.mean(v, axis=axes, keepdims=True)
        var = jnp.mean((v - m) ** 2, axis=axes, keepdims=True)
        return (v - m) * jax.lax.rsqrt(var + EPS) * g + b

    xc = x.reshape(B, C, S)
    y = jnp.einsum('rc,bcs->brs', params["conv_w"], xc) + params["conv_b"]
    y = jnp.maximum(bn(y, params["bn2d_g"].reshape(1, Cr, 1),
                       params["bn2d_b"].reshape(1, Cr, 1), (0, 2)), 0.0)
    feat = y.reshape(B, Cr * S)                       # PyTorch x.reshape(-1, flatten_size)

    h0, c0 = hidden
    # mirror the kernel's MXU storage/operand precision (weights stored in bf16,
    # operand cast controlled by MXU_OPERAND_DTYPE, float32 accumulation)
    q = lambda a: a.astype(MXU_OPERAND_DTYPE).astype(jnp.float32)
    gates = (q(feat) @ params["w_ih_T"].astype(jnp.float32)
             + q(h0[0]) @ params["w_hh_T"].astype(jnp.float32) + params["b_gates"])
    i = _sigmoid(gates[:, 0 * Hl:1 * Hl])
    f = _sigmoid(gates[:, 1 * Hl:2 * Hl])
    g = jnp.tanh(gates[:, 2 * Hl:3 * Hl])
    o = _sigmoid(gates[:, 3 * Hl:4 * Hl])
    c1 = f * c0[0] + i * g
    h1 = o * jnp.tanh(c1)

    z = jnp.maximum(bn(h1, params["bn1_g"][None], params["bn1_b"][None], (0,)), 0.0)
    z = z @ params["w1_T"] + params["b1"]
    z = jnp.maximum(bn(z, params["bn2_g"][None], params["bn2_b"][None], (0,)), 0.0)
    out = z @ params["w2_T"] + params["b2"]
    return out, (h1[None], c1[None])


# ------------------------------------------------------------------------------------
# Deterministic parameter construction (shapes follow the module __init__)
# ------------------------------------------------------------------------------------
def init_params(key, num_channels, reduced_channels, spatial, lstm_hidden_size,
                fc_hidden, output_support_size):
    C, Cr, S, Hl = num_channels, reduced_channels, spatial, lstm_hidden_size
    F = Cr * S
    ks = jax.random.split(key, 9)

    def u(k, shape, fan_in):
        s = 1.0 / np.sqrt(fan_in)
        return jax.random.uniform(k, shape, jnp.float32, -s, s)

    return {
        # conv1x1_reward: weight (Cr, C, 1, 1) stored squeezed; bias only used by the
        # reference (the batch-stats BatchNorm that follows cancels it exactly).
        "conv_w": u(ks[0], (Cr, C), C),
        "conv_b": u(ks[1], (Cr, 1), C),
        "bn2d_g": jnp.ones((Cr,), jnp.float32),
        "bn2d_b": jnp.zeros((Cr,), jnp.float32),
        # LSTM (single layer, single step): weights stored pre-transposed; gate weights
        # in bf16 (halves the dominant DMA; native MXU dtype on v6e/v7x).
        "w_ih_T": u(ks[2], (F, 4 * Hl), Hl).astype(MXU_WEIGHT_DTYPE),
        "w_hh_T": u(ks[3], (Hl, 4 * Hl), Hl).astype(MXU_WEIGHT_DTYPE),
        "b_gates": u(ks[4], (1, 4 * Hl), Hl),                    # b_ih + b_hh combined
        "bn1_g": jnp.ones((Hl,), jnp.float32),
        "bn1_b": jnp.zeros((Hl,), jnp.float32),
        # fc = mlp(Hl, [fc_hidden], out): Linear -> BN1d -> ReLU -> Linear
        "w1_T": u(ks[5], (Hl, fc_hidden), Hl),
        "b1": u(ks[6], (1, fc_hidden), Hl),                      # cancelled by BN (ref only)
        "bn2_g": jnp.ones((fc_hidden,), jnp.float32),
        "bn2_b": jnp.zeros((fc_hidden,), jnp.float32),
        "w2_T": u(ks[7], (fc_hidden, output_support_size), fc_hidden),
        "b2": u(ks[8], (1, output_support_size), fc_hidden),
        # TODO(synk): init_zero=True would zero-init w2_T/b2; modeled with init_zero=False.
    }


if __name__ == "__main__":
    B, C, Himg, Wimg = 8, 4, 16, 16
    reduced_channels = 2
    lstm_hidden_size = 32                 # 4*Hl == 128 lanes (kernel packing assumption)
    fc_hidden = 32                        # fc_layers = [32]
    output_support_size = 21

    cfg = dict(num_channels=C, reduced_channels=reduced_channels, spatial=Himg * Wimg,
               flatten_size=reduced_channels * Himg * Wimg, fc_hidden=fc_hidden,
               lstm_hidden_size=lstm_hidden_size, output_support_size=output_support_size)

    key = jax.random.PRNGKey(0)
    kx, kh, kc, kp = jax.random.split(key, 4)
    x = jax.random.normal(kx, (B, C, Himg, Wimg), jnp.float32)
    h0 = jax.random.normal(kh, (1, B, lstm_hidden_size), jnp.float32)
    c0 = jax.random.normal(kc, (1, B, lstm_hidden_size), jnp.float32)
    params = init_params(kp, C, reduced_channels, Himg * Wimg,
                         lstm_hidden_size, fc_hidden, output_support_size)
    packed = pack_params(params, cfg)

    out, (h1, c1) = support_lstm_forward(x, (h0, c0), packed, cfg)
    jax.block_until_ready((out, h1, c1))

    ref_out, (ref_h1, ref_c1) = reference_forward(x, (h0, c0), params, cfg)
    assert out.shape == (B, output_support_size)
    assert h1.shape == (1, B, lstm_hidden_size) and c1.shape == (1, B, lstm_hidden_size)
    np.testing.assert_allclose(np.asarray(h1), np.asarray(ref_h1), rtol=1e-4, atol=1e-4)
    np.testing.assert_allclose(np.asarray(c1), np.asarray(ref_c1), rtol=1e-4, atol=1e-4)
    # the final logits pass through two batch-stats BatchNorms (batch of 8) which divide
    # by per-feature batch std and can amplify tiny fp reassociation differences by
    # 1-2 orders of magnitude; 1e-3 leaves comfortable margin.
    np.testing.assert_allclose(np.asarray(out), np.asarray(ref_out), rtol=1e-3, atol=1e-3)

    print("KERNEL_OK")
</pallas_src>

<mosaic_0001>
module attributes {stable_mosaic.version = 11 : i64} {
  func.func @fused_kernel(%arg0: memref<16xf32, #tpu.memory_space<smem>>, %arg1: memref<8x4x256xf32, #tpu.memory_space<vmem>>, %arg2: memref<640x128xbf16, #tpu.memory_space<vmem>>, %arg3: memref<264x128xf32, #tpu.memory_space<vmem>>, %arg4: memref<8x128xf32, #tpu.memory_space<vmem>>, %arg5: memref<8x128xf32, #tpu.memory_space<vmem>>) attributes {dimension_semantics = [], scalar_prefetch = 0 : i64, scratch_operands = 0 : i64, tpu.core_type = #tpu.core_type<tc>} {
    %c0 = arith.constant 0 : index
    %c0_0 = arith.constant 0 : index
    %c0_1 = arith.constant 0 : index
    %0 = vector.load %arg1[%c0, %c0_0, %c0_1] : memref<8x4x256xf32, #tpu.memory_space<vmem>>, vector<8x4x256xf32>
    %1 = vector.extract_strided_slice %0 {offsets = [0, 0, 0], sizes = [8, 1, 256], strides = [1, 1, 1]} : vector<8x4x256xf32> to vector<8x1x256xf32>
    %2 = vector.shape_cast %1 : vector<8x1x256xf32> to vector<8x256xf32>
    %3 = vector.extract_strided_slice %0 {offsets = [0, 1, 0], sizes = [8, 1, 256], strides = [1, 1, 1]} : vector<8x4x256xf32> to vector<8x1x256xf32>
    %4 = vector.shape_cast %3 : vector<8x1x256xf32> to vector<8x256xf32>
    %5 = vector.extract_strided_slice %0 {offsets = [0, 2, 0], sizes = [8, 1, 256], strides = [1, 1, 1]} : vector<8x4x256xf32> to vector<8x1x256xf32>
    %6 = vector.shape_cast %5 : vector<8x1x256xf32> to vector<8x256xf32>
    %7 = vector.extract_strided_slice %0 {offsets = [0, 3, 0], sizes = [8, 1, 256], strides = [1, 1, 1]} : vector<8x4x256xf32> to vector<8x1x256xf32>
    %8 = vector.shape_cast %7 : vector<8x1x256xf32> to vector<8x256xf32>
    %c0_2 = arith.constant 0 : index
    %9 = memref.load %arg0[%c0_2] : memref<16xf32, #tpu.memory_space<smem>>
    %10 = vector.broadcast %9 : f32 to vector<8x256xf32>
    %11 = arith.mulf %10, %2 : vector<8x256xf32>
    %c1 = arith.constant 1 : index
    %12 = memref.load %arg0[%c1] : memref<16xf32, #tpu.memory_space<smem>>
    %13 = vector.broadcast %12 : f32 to vector<8x256xf32>
    %14 = arith.mulf %13, %4 : vector<8x256xf32>
    %15 = arith.addf %11, %14 : vector<8x256xf32>
    %c2 = arith.constant 2 : index
    %16 = memref.load %arg0[%c2] : memref<16xf32, #tpu.memory_space<smem>>
    %17 = vector.broadcast %16 : f32 to vector<8x256xf32>
    %18 = arith.mulf %17, %6 : vector<8x256xf32>
    %19 = arith.addf %15, %18 : vector<8x256xf32>
    %c3 = arith.constant 3 : index
    %20 = memref.load %arg0[%c3] : memref<16xf32, #tpu.memory_space<smem>>
    %21 = vector.broadcast %20 : f32 to vector<8x256xf32>
    %22 = arith.mulf %21, %8 : vector<8x256xf32>
    %23 = arith.addf %19, %22 : vector<8x256xf32>
    %cst = arith.constant dense<0.000000e+00> : vector<8xf32>
    %24 = vector.multi_reduction <add>, %23, %cst [1] : vector<8x256xf32> to vector<8xf32>
    %25 = vector.shape_cast %24 : vector<8xf32> to vector<8x1xf32>
    %cst_3 = arith.constant dense<0.000000e+00> : vector<1xf32>
    %26 = vector.multi_reduction <add>, %25, %cst_3 [0] : vector<8x1xf32> to vector<1xf32>
    %27 = vector.shape_cast %26 : vector<1xf32> to vector<1x1xf32>
    %cst_4 = arith.constant 4.8828125E-4 : f32
    %28 = vector.broadcast %cst_4 : f32 to vector<1x1xf32>
    %29 = arith.mulf %27, %28 : vector<1x1xf32>
    %30 = vector.broadcast %29 : vector<1x1xf32> to vector<8x256xf32>
    %31 = arith.subf %23, %30 : vector<8x256xf32>
    %32 = arith.mulf %31, %31 : vector<8x256xf32>
    %cst_5 = arith.constant dense<0.000000e+00> : vector<8xf32>
    %33 = vector.multi_reduction <add>, %32, %cst_5 [1] : vector<8x256xf32> to vector<8xf32>
    %34 = vector.shape_cast %33 : vector<8xf32> to vector<8x1xf32>
    %cst_6 = arith.constant dense<0.000000e+00> : vector<1xf32>
    %35 = vector.multi_reduction <add>, %34, %cst_6 [0] : vector<8x1xf32> to vector<1xf32>
    %36 = vector.shape_cast %35 : vector<1xf32> to vector<1x1xf32>
    %cst_7 = arith.constant 4.8828125E-4 : f32
    %37 = vector.broadcast %cst_7 : f32 to vector<1x1xf32>
    %38 = arith.mulf %36, %37 : vector<1x1xf32>
    %cst_8 = arith.constant 9.99999974E-6 : f32
    %39 = vector.broadcast %cst_8 : f32 to vector<1x1xf32>
    %40 = arith.addf %38, %39 : vector<1x1xf32>
    %41 = math.rsqrt %40 : vector<1x1xf32>
    %42 = vector.broadcast %41 : vector<1x1xf32> to vector<8x256xf32>
    %43 = arith.mulf %31, %42 : vector<8x256xf32>
    %c8 = arith.constant 8 : index
    %44 = memref.load %arg0[%c8] : memref<16xf32, #tpu.memory_space<smem>>
    %45 = vector.broadcast %44 : f32 to vector<8x256xf32>
    %46 = arith.mulf %43, %45 : vector<8x256xf32>
    %c10 = arith.constant 10 : index
    %47 = memref.load %arg0[%c10] : memref<16xf32, #tpu.memory_space<smem>>
    %48 = vector.broadcast %47 : f32 to vector<8x256xf32>
    %49 = arith.addf %46, %48 : vector<8x256xf32>
    %cst_9 = arith.constant 0.000000e+00 : f32
    %50 = vector.broadcast %cst_9 : f32 to vector<8x256xf32>
    %51 = arith.maximumf %49, %50 : vector<8x256xf32>
    %c4 = arith.constant 4 : index
    %52 = memref.load %arg0[%c4] : memref<16xf32, #tpu.memory_space<smem>>
    %53 = vector.broadcast %52 : f32 to vector<8x256xf32>
    %54 = arith.mulf %53, %2 : vector<8x256xf32>
    %c5 = arith.constant 5 : index
    %55 = memref.load %arg0[%c5] : memref<16xf32, #tpu.memory_space<smem>>
    %56 = vector.broadcast %55 : f32 to vector<8x256xf32>
    %57 = arith.mulf %56, %4 : vector<8x256xf32>
    %58 = arith.addf %54, %57 : vector<8x256xf32>
    %c6 = arith.constant 6 : index
    %59 = memref.load %arg0[%c6] : memref<16xf32, #tpu.memory_space<smem>>
    %60 = vector.broadcast %59 : f32 to vector<8x256xf32>
    %61 = arith.mulf %60, %6 : vector<8x256xf32>
    %62 = arith.addf %58, %61 : vector<8x256xf32>
    %c7 = arith.constant 7 : index
    %63 = memref.load %arg0[%c7] : memref<16xf32, #tpu.memory_space<smem>>
    %64 = vector.broadcast %63 : f32 to vector<8x256xf32>
    %65 = arith.mulf %64, %8 : vector<8x256xf32>
    %66 = arith.addf %62, %65 : vector<8x256xf32>
    %cst_10 = arith.constant dense<0.000000e+00> : vector<8xf32>
    %67 = vector.multi_reduction <add>, %66, %cst_10 [1] : vector<8x256xf32> to vector<8xf32>
    %68 = vector.shape_cast %67 : vector<8xf32> to vector<8x1xf32>
    %cst_11 = arith.constant dense<0.000000e+00> : vector<1xf32>
    %69 = vector.multi_reduction <add>, %68, %cst_11 [0] : vector<8x1xf32> to vector<1xf32>
    %70 = vector.shape_cast %69 : vector<1xf32> to vector<1x1xf32>
    %cst_12 = arith.constant 4.8828125E-4 : f32
    %71 = vector.broadcast %cst_12 : f32 to vector<1x1xf32>
    %72 = arith.mulf %70, %71 : vector<1x1xf32>
    %73 = vector.broadcast %72 : vector<1x1xf32> to vector<8x256xf32>
    %74 = arith.subf %66, %73 : vector<8x256xf32>
    %75 = arith.mulf %74, %74 : vector<8x256xf32>
    %cst_13 = arith.constant dense<0.000000e+00> : vector<8xf32>
    %76 = vector.multi_reduction <add>, %75, %cst_13 [1] : vector<8x256xf32> to vector<8xf32>
    %77 = vector.shape_cast %76 : vector<8xf32> to vector<8x1xf32>
    %cst_14 = arith.constant dense<0.000000e+00> : vector<1xf32>
    %78 = vector.multi_reduction <add>, %77, %cst_14 [0] : vector<8x1xf32> to vector<1xf32>
    %79 = vector.shape_cast %78 : vector<1xf32> to vector<1x1xf32>
    %cst_15 = arith.constant 4.8828125E-4 : f32
    %80 = vector.broadcast %cst_15 : f32 to vector<1x1xf32>
    %81 = arith.mulf %79, %80 : vector<1x1xf32>
    %cst_16 = arith.constant 9.99999974E-6 : f32
    %82 = vector.broadcast %cst_16 : f32 to vector<1x1xf32>
    %83 = arith.addf %81, %82 : vector<1x1xf32>
    %84 = math.rsqrt %83 : vector<1x1xf32>
    %85 = vector.broadcast %84 : vector<1x1xf32> to vector<8x256xf32>
    %86 = arith.mulf %74, %85 : vector<8x256xf32>
    %c9 = arith.constant 9 : index
    %87 = memref.load %arg0[%c9] : memref<16xf32, #tpu.memory_space<smem>>
    %88 = vector.broadcast %87 : f32 to vector<8x256xf32>
    %89 = arith.mulf %86, %88 : vector<8x256xf32>
    %c11 = arith.constant 11 : index
    %90 = memref.load %arg0[%c11] : memref<16xf32, #tpu.memory_space<smem>>
    %91 = vector.broadcast %90 : f32 to vector<8x256xf32>
    %92 = arith.addf %89, %91 : vector<8x256xf32>
    %cst_17 = arith.constant 0.000000e+00 : f32
    %93 = vector.broadcast %cst_17 : f32 to vector<8x256xf32>
    %94 = arith.maximumf %92, %93 : vector<8x256xf32>
    %c0_18 = arith.constant 0 : index
    %c0_19 = arith.constant 0 : index
    %95 = vector.load %arg4[%c0_18, %c0_19] : memref<8x128xf32, #tpu.memory_space<vmem>>, vector<8x128xf32>
    %96 = tpu.concatenate %51, %94, %95 in 1 : vector<8x256xf32>, vector<8x256xf32>, vector<8x128xf32> -> vector<8x640xf32>
    %c0_20 = arith.constant 0 : index
    %c0_21 = arith.constant 0 : index
    %97 = vector.load %arg2[%c0_20, %c0_21] : memref<640x128xbf16, #tpu.memory_space<vmem>>, vector<640x128xbf16>
    %98 = arith.extf %97 : vector<640x128xbf16> to vector<640x128xf32>
    %cst_22 = arith.constant dense<0.000000e+00> : vector<8x128xf32>
    %99 = tpu.matmul %96, %98, %cst_22 {dimension_numbers = #tpu.dot_dimension_numbers<[1], [0], [0], [1], [0, 0, 1, 1], [], []>} : vector<8x640xf32>, vector<640x128xf32>, vector<8x128xf32> -> vector<8x128xf32>
    %c0_23 = arith.constant 0 : index
    %c0_24 = arith.constant 0 : index
    %100 = vector.load %arg3[%c0_23, %c0_24] : memref<264x128xf32, #tpu.memory_space<vmem>>, vector<1x128xf32>
    %101 = vector.broadcast %100 : vector<1x128xf32> to vector<8x128xf32>
    %102 = arith.addf %99, %101 : vector<8x128xf32>
    %103 = tpu.iota {dimensions = array<i32: 1>} : vector<8x128xi32>
    %c64_i32 = arith.constant 64 : i32
    %104 = vector.broadcast %c64_i32 : i32 to vector<8x128xi32>
    %105 = arith.cmpi sge, %103, %104 : vector<8x128xi32>
    %c96_i32 = arith.constant 96 : i32
    %106 = vector.broadcast %c96_i32 : i32 to vector<8x128xi32>
    %107 = arith.cmpi slt, %103, %106 : vector<8x128xi32>
    %108 = arith.andi %105, %107 : vector<8x128xi1>
    %109 = math.tanh %102 : vector<8x128xf32>
    %cst_25 = arith.constant 0.000000e+00 : f32
    %110 = vector.broadcast %cst_25 : f32 to vector<8x128xf32>
    %111 = arith.subf %110, %102 : vector<8x128xf32>
    %112 = math.exp %111 : vector<8x128xf32>
    %cst_26 = arith.constant 1.000000e+00 : f32
    %113 = vector.broadcast %cst_26 : f32 to vector<8x128xf32>
    %114 = arith.addf %113, %112 : vector<8x128xf32>
    %cst_27 = arith.constant 1.000000e+00 : f32
    %115 = vector.broadcast %cst_27 : f32 to vector<8x128xf32>
    %116 = arith.divf %115, %114 : vector<8x128xf32>
    %117 = arith.select %108, %109, %116 : vector<8x128xi1>, vector<8x128xf32>
    %c32_i32 = arith.constant 32 : i32
    %118 = tpu.dynamic_rotate %117 by %c32_i32 dim 1 : vector<8x128xf32>, i32 -> vector<8x128xf32>
    %c96_i32_28 = arith.constant 96 : i32
    %119 = tpu.dynamic_rotate %117 by %c96_i32_28 dim 1 : vector<8x128xf32>, i32 -> vector<8x128xf32>
    %c0_29 = arith.constant 0 : index
    %c0_30 = arith.constant 0 : index
    %120 = vector.load %arg4[%c0_29, %c0_30] : memref<8x128xf32, #tpu.memory_space<vmem>>, vector<8x128xf32>
    %121 = arith.mulf %117, %120 : vector<8x128xf32>
    %122 = arith.mulf %118, %119 : vector<8x128xf32>
    %123 = arith.addf %121, %122 : vector<8x128xf32>
    %c96_i32_31 = arith.constant 96 : i32
    %124 = tpu.dynamic_rotate %123 by %c96_i32_31 dim 1 : vector<8x128xf32>, i32 -> vector<8x128xf32>
    %125 = math.tanh %124 : vector<8x128xf32>
    %126 = arith.mulf %118, %125 : vector<8x128xf32>
    %c1_32 = arith.constant 1 : index
    %c0_33 = arith.constant 0 : index
    %127 = vector.load %arg3[%c1_32, %c0_33] : memref<264x128xf32, #tpu.memory_space<vmem>>, vector<1x128xf32>
    %c2_34 = arith.constant 2 : index
    %c0_35 = arith.constant 0 : index
    %128 = vector.load %arg3[%c2_34, %c0_35] : memref<264x128xf32, #tpu.memory_space<vmem>>, vector<1x128xf32>
    %cst_36 = arith.constant dense<0.000000e+00> : vector<128xf32>
    %129 = vector.multi_reduction <add>, %126, %cst_36 [0] : vector<8x128xf32> to vector<128xf32>
    %130 = vector.shape_cast %129 : vector<128xf32> to vector<1x128xf32>
    %cst_37 = arith.constant 8.000000e+00 : f32
    %131 = vector.broadcast %cst_37 : f32 to vector<1x128xf32>
    %132 = arith.divf %130, %131 : vector<1x128xf32>
    %133 = vector.broadcast %132 : vector<1x128xf32> to vector<8x128xf32>
    %134 = arith.subf %126, %133 : vector<8x128xf32>
    %135 = arith.mulf %134, %134 : vector<8x128xf32>
    %cst_38 = arith.constant dense<0.000000e+00> : vector<128xf32>
    %136 = vector.multi_reduction <add>, %135, %cst_38 [0] : vector<8x128xf32> to vector<128xf32>
    %137 = vector.shape_cast %136 : vector<128xf32> to vector<1x128xf32>
    %cst_39 = arith.constant 8.000000e+00 : f32
    %138 = vector.broadcast %cst_39 : f32 to vector<1x128xf32>
    %139 = arith.divf %137, %138 : vector<1x128xf32>
    %cst_40 = arith.constant 9.99999974E-6 : f32
    %140 = vector.broadcast %cst_40 : f32 to vector<1x128xf32>
    %141 = arith.addf %139, %140 : vector<1x128xf32>
    %142 = math.rsqrt %141 : vector<1x128xf32>
    %143 = vector.broadcast %142 : vector<1x128xf32> to vector<8x128xf32>
    %144 = arith.mulf %134, %143 : vector<8x128xf32>
    %145 = vector.broadcast %127 : vector<1x128xf32> to vector<8x128xf32>
    %146 = arith.mulf %144, %145 : vector<8x128xf32>
    %147 = vector.broadcast %128 : vector<1x128xf32> to vector<8x128xf32>
    %148 = arith.addf %146, %147 : vector<8x128xf32>
    %cst_41 = arith.constant 0.000000e+00 : f32
    %149 = vector.broadcast %cst_41 : f32 to vector<8x128xf32>
    %150 = arith.maximumf %148, %149 : vector<8x128xf32>
    %c8_42 = arith.constant 8 : index
    %c0_43 = arith.constant 0 : index
    %151 = vector.load %arg3[%c8_42, %c0_43] : memref<264x128xf32, #tpu.memory_space<vmem>>, vector<128x128xf32>
    %cst_44 = arith.constant dense<0.000000e+00> : vector<8x128xf32>
    %152 = tpu.matmul %150, %151, %cst_44 {dimension_numbers = #tpu.dot_dimension_numbers<[1], [0], [0], [1], [0, 0, 1, 1], [], []>} : vector<8x128xf32>, vector<128x128xf32>, vector<8x128xf32> -> vector<8x128xf32>
    %c3_45 = arith.constant 3 : index
    %c0_46 = arith.constant 0 : index
    %153 = vector.load %arg3[%c3_45, %c0_46] : memref<264x128xf32, #tpu.memory_space<vmem>>, vector<1x128xf32>
    %c4_47 = arith.constant 4 : index
    %c0_48 = arith.constant 0 : index
    %154 = vector.load %arg3[%c4_47, %c0_48] : memref<264x128xf32, #tpu.memory_space<vmem>>, vector<1x128xf32>
    %cst_49 = arith.constant dense<0.000000e+00> : vector<128xf32>
    %155 = vector.multi_reduction <add>, %152, %cst_49 [0] : vector<8x128xf32> to vector<128xf32>
    %156 = vector.shape_cast %155 : vector<128xf32> to vector<1x128xf32>
    %cst_50 = arith.constant 8.000000e+00 : f32
    %157 = vector.broadcast %cst_50 : f32 to vector<1x128xf32>
    %158 = arith.divf %156, %157 : vector<1x128xf32>
    %159 = vector.broadcast %158 : vector<1x128xf32> to vector<8x128xf32>
    %160 = arith.subf %152, %159 : vector<8x128xf32>
    %161 = arith.mulf %160, %160 : vector<8x128xf32>
    %cst_51 = arith.constant dense<0.000000e+00> : vector<128xf32>
    %162 = vector.multi_reduction <add>, %161, %cst_51 [0] : vector<8x128xf32> to vector<128xf32>
    %163 = vector.shape_cast %162 : vector<128xf32> to vector<1x128xf32>
    %cst_52 = arith.constant 8.000000e+00 : f32
    %164 = vector.broadcast %cst_52 : f32 to vector<1x128xf32>
    %165 = arith.divf %163, %164 : vector<1x128xf32>
    %cst_53 = arith.constant 9.99999974E-6 : f32
    %166 = vector.broadcast %cst_53 : f32 to vector<1x128xf32>
    %167 = arith.addf %165, %166 : vector<1x128xf32>
    %168 = math.rsqrt %167 : vector<1x128xf32>
    %169 = vector.broadcast %168 : vector<1x128xf32> to vector<8x128xf32>
    %170 = arith.mulf %160, %169 : vector<8x128xf32>
    %171 = vector.broadcast %153 : vector<1x128xf32> to vector<8x128xf32>
    %172 = arith.mulf %170, %171 : vector<8x128xf32>
    %173 = vector.broadcast %154 : vector<1x128xf32> to vector<8x128xf32>
    %174 = arith.addf %172, %173 : vector<8x128xf32>
    %cst_54 = arith.constant 0.000000e+00 : f32
    %175 = vector.broadcast %cst_54 : f32 to vector<8x128xf32>
    %176 = arith.maximumf %174, %175 : vector<8x128xf32>
    %c136 = arith.constant 136 : index
    %c0_55 = arith.constant 0 : index
    %177 = vector.load %arg3[%c136, %c0_55] : memref<264x128xf32, #tpu.memory_space<vmem>>, vector<128x128xf32>
    %cst_56 = arith.constant dense<0.000000e+00> : vector<8x128xf32>
    %178 = tpu.matmul %176, %177, %cst_56 {dimension_numbers = #tpu.dot_dimension_numbers<[1], [0], [0], [1], [0, 0, 1, 1], [], []>} : vector<8x128xf32>, vector<128x128xf32>, vector<8x128xf32> -> vector<8x128xf32>
    %c5_57 = arith.constant 5 : index
    %c0_58 = arith.constant 0 : index
    %179 = vector.load %arg3[%c5_57, %c0_58] : memref<264x128xf32, #tpu.memory_space<vmem>>, vector<1x128xf32>
    %180 = vector.broadcast %179 : vector<1x128xf32> to vector<8x128xf32>
    %181 = arith.addf %178, %180 : vector<8x128xf32>
    %182 = tpu.iota {dimensions = array<i32: 1>} : vector<8x128xi32>
    %c32_i32_59 = arith.constant 32 : i32
    %183 = vector.broadcast %c32_i32_59 : i32 to vector<8x128xi32>
    %184 = arith.cmpi slt, %182, %183 : vector<8x128xi32>
    %c64_i32_60 = arith.constant 64 : i32
    %185 = vector.broadcast %c64_i32_60 : i32 to vector<8x128xi32>
    %186 = arith.cmpi slt, %182, %185 : vector<8x128xi32>
    %187 = arith.select %186, %123, %181 : vector<8x128xi1>, vector<8x128xf32>
    %188 = arith.select %184, %126, %187 : vector<8x128xi1>, vector<8x128xf32>
    %c0_61 = arith.constant 0 : index
    %c0_62 = arith.constant 0 : index
    %189 = vector.load %arg5[%c0_61, %c0_62] : memref<8x128xf32, #tpu.memory_space<vmem>>, vector<8x128xf32>
    tpu.vector_store %arg5[%c0_61, %c0_62], %188 {strides = array<i32>} : memref<8x128xf32, #tpu.memory_space<vmem>>, vector<8x128xf32>,
    return
  }
}

</mosaic_0001>

<bundles_post_ra>
// kernel: tpu_custom_call.1
= control target key start
LH: loop header
LB: loop body
LE: loop exit
PB: predicated region body
PF: predicated region fallthrough
CT: control target
= control target key end

     0   :  { %10 = vsyncpa [#allocation5], 0  ;;  %s3105_s0 = inlined_call_operand.hbm [shape: f32[16], index: 0, kind: input, shape index: {}]   ;;  %s3106_s1 = inlined_call_operand.hbm [shape: f32[8,4,256], index: 1, kind: input, shape index: {}]   ;;  %s3107_s2 = inlined_call_operand.hbm [shape: bf16[640,128], index: 2, kind: input, shape index: {}]   ;;  %s3108_s3 = inlined_call_operand.hbm [shape: f32[264,128], index: 3, kind: input, shape index: {}]   ;;  %s3109_s4 = inlined_call_operand.vmem [shape: f32[8,128], index: 4, kind: input, shape index: {}]   ;;  %s3110_s5 = inlined_call_operand.hbm [shape: f32[8,128], index: 5, kind: output, shape index: {}]  }
   0x1   :  { %11 = vsyncpa [#allocation3], 0 }
   0x2   :  { %12 = vsyncpa [#allocation8], 0 }
   0x3   :  { %13 = vsyncpa [#allocation4], 0  ;;  %s2510_s18 = smov [#allocation7]   ;;  %s2404_s22 = scalar_lea.hbm %s3107_s2, 5120 }
   0x4   :  { %s39_s19 = sshll.u32 %s2510_s18, 4  ;;  %p2405_p0 = scmp.ne.s32.totalorder %s3107_s2, %s2404_s22  ;;  %s40_s19 = int_to_ptr.vmem [resolvable:$true] %s39_s19 }
   0x5   :  { %p2408_p1 = scmp.lt.u32.totalorder %s2404_s22, %s3107_s2 }
   0x7   :  { %p2410_p2 = pnand %p2408_p1, %p2405_p0 }
   0x9   :  { %2413 = shalt.err (!%p2410_p2)
}
   0xa   :  { %s2414_s27 = scalar_lea.vmem %s40_s19, 5120  ;;  %p2419_p4 = scmp.lt.s32.totalorder %s40_s19, %s40_s19 }
   0xb   :  { %p2415_p3 = scmp.ne.s32.totalorder %s40_s19, %s2414_s27  ;;  %p2420_p5 = scmp.lt.s32.totalorder %s2414_s27, %s2414_s27 }
   0xd   :  { %p2421_p6 = por %p2420_p5, %p2419_p4 }
   0xf   :  { %p2422_p7 = pnand %p2421_p6, %p2415_p3 }
  0x11   :  { %2425 = shalt.err (!%p2422_p7)
}
  0x12   :  { %s2511_s28 = smov 64   ;;  %s2512_s29 = smov 4  }
  0x13   :  { %45 = dma.hbm_to_vmem [thread:$0]  %s3107_s2, 5120, %s40_s19, [#allocation8], %s2511_s28, %s2511_s28, %s2512_s29  }
  0x14   :  { %s2426_s9 = scalar_lea.hbm %s3105_s0, 16 }
  0x15   :  { %p2427_p8 = scmp.ne.s32.totalorder %s3105_s0, %s2426_s9  ;;  %p2430_p9 = scmp.lt.u32.totalorder %s2426_s9, %s3105_s0 }
  0x17   :  { %p2432_p10 = pnand %p2430_p9, %p2427_p8 }
  0x19   :  { %2435 = shalt.err (!%p2432_p10)
}
  0x1a   :  { %s2513_s14 = smov [#allocation2]   ;;  %s2514_s2 = smov [#allocation6]  }
  0x1b   :  { %21 = dma.hbm_to_smem %s3105_s0, 16, %s2513_s14, [#allocation5]  }
  0x1c   :  { %s27_s17 = sshll.u32 %s2514_s2, 4  ;;  %s2436_s20 = scalar_lea.hbm %s3106_s1, 1024  ;;  %s28_s17 = int_to_ptr.vmem [resolvable:$true] %s27_s17 }
  0x1d   :  { %p2437_p11 = scmp.ne.s32.totalorder %s3106_s1, %s2436_s20  ;;  %p2440_p12 = scmp.lt.u32.totalorder %s2436_s20, %s3106_s1 }
  0x1f   :  { %p2442_p13 = pnand %p2440_p12, %p2437_p11 }
  0x21   :  { %2445 = shalt.err (!%p2442_p13)
}
  0x22   :  { %s2446_s25 = scalar_lea.vmem %s28_s17, 1024  ;;  %p2451_p1 = scmp.lt.s32.totalorder %s28_s17, %s28_s17 }
  0x23   :  { %p2447_p0 = scmp.ne.s32.totalorder %s28_s17, %s2446_s25  ;;  %p2452_p2 = scmp.lt.s32.totalorder %s2446_s25, %s2446_s25 }
  0x25   :  { %p2453_p3 = por %p2452_p2, %p2451_p1 }
  0x27   :  { %p2454_p4 = pnand %p2453_p3, %p2447_p0 }
  0x29   :  { %2457 = shalt.err (!%p2454_p4)
}
  0x2a   :  { %s2515_s0 = smov 128   ;;  %s2516_s26 = smov 8  }
  0x2b   :  { %33 = dma.hbm_to_vmem [thread:$0]  %s3106_s1, 1024, %s28_s17, [#allocation3], %s2515_s0, %s2515_s0, %s2516_s26  }
  0x2c   :  { %s2517_s29 = smov [#allocation9]   ;;  %s2458_s8 = scalar_lea.hbm %s3108_s3, 4224 }
  0x2d   :  { %s51_s30 = sshll.u32 %s2517_s29, 4  ;;  %p2459_p5 = scmp.ne.s32.totalorder %s3108_s3, %s2458_s8  ;;  %s52_s30 = int_to_ptr.vmem [resolvable:$true] %s51_s30 }
  0x2e   :  { %p2462_p6 = scmp.lt.u32.totalorder %s2458_s8, %s3108_s3 }
  0x30   :  { %p2464_p7 = pnand %p2462_p6, %p2459_p5 }
  0x32   :  { %2467 = shalt.err (!%p2464_p7)
}
  0x33   :  { %s2468_s13 = scalar_lea.vmem %s52_s30, 4224  ;;  %p2473_p9 = scmp.lt.s32.totalorder %s52_s30, %s52_s30 }
  0x34   :  { %p2469_p8 = scmp.ne.s32.totalorder %s52_s30, %s2468_s13  ;;  %p2474_p10 = scmp.lt.s32.totalorder %s2468_s13, %s2468_s13 }
  0x36   :  { %p2475_p11 = por %p2474_p10, %p2473_p9 }
  0x38   :  { %p2476_p12 = pnand %p2475_p11, %p2469_p8 }
  0x3a   :  { %2479 = shalt.err (!%p2476_p12)
}
  0x3b   :  { %57 = dma.hbm_to_vmem [thread:$0]  %s3108_s3, 4224, %s52_s30, [#allocation8], %s2515_s0, %s2515_s0, %s2516_s26  }
  0x3c   :  { %2502 = dma.done.wait [#allocation5], 16  }
  0x3d   :  { %2503 = vsyncadd [#allocation5], 4294967280 }
  0x3e   :  { %2504 = dma.done.wait [#allocation3], 1024  }
  0x3f   :  { %2505 = vsyncadd [#allocation3], 4294966272 }
  0x40   :  { %2506 = dma.done.wait [#allocation8], 9344  }
  0x41   :  { %2507 = vsyncadd [#allocation8], 4294957952 }
  0x42   :  { %72 = sfence }
  0x43   :  { %s81_s15 = sld [smem:[#allocation2]]  ;;  %v249_v0 = vlaneseq  ;;  %s1748_s16 = sld [smem:[#allocation2 + $0x1]]  ;;  %v2603_v2 = vld [vmem:[#allocation6] sm:$0xff]  ;;  %v2605_v3 = vld [vmem:[#allocation6 + $0x8] sm:$0xff]  ;;  %v2607_v4 = vld [vmem:[#allocation6 + $0x10] sm:$0xff]  ;;  %vm313_vm0 = vcmask 1041409  }
  0x44   :  { %s1757_s2 = sld [smem:[#allocation2 + $0x2]]  ;;  %s1766_s17 = sld [smem:[#allocation2 + $0x3]]  ;;  %v2609_v5 = vld [vmem:[#allocation6 + $0x18] sm:$0xff]  ;;  %v2611_v6 = vld [vmem:[#allocation6 + $0x20] sm:$0xff]  ;;  %v2617_v10 = vld [vmem:[#allocation6 + $0x28] sm:$0xff]  ;;  %vm315_vm1 = vcmask 1042434  }
  0x45   :  { %v250_v1 = vshrl.u32 %v249_v0, 7  ;;  %s1777_s18 = sld [smem:[#allocation2 + $0x4]]  ;;  %v2619_v11 = vld [vmem:[#allocation6 + $0x30] sm:$0xff]  ;;  %v2621_v12 = vld [vmem:[#allocation6 + $0x38] sm:$0xff]  ;;  %vm317_vm2 = vcmask 1043459   ;;  %vm319_vm3 = vcmask 1044484  }
  0x46   :  { %vm321_vm4 = vcmask 1045509   ;;  %vm323_vm5 = vcmask 1046534   ;;  %vm325_vm6 = vcmask 1047559   ;;  %s2681_s3 = sld [smem:[#allocation2 + $0x5]]  ;;  %s2683_s19 = sld [smem:[#allocation2 + $0x6]]  ;;  %vm2519_vm7 = vmmov 0  }
  0x47   :  { %v2613_v8 = vsub.s32 0, %v250_v1  ;;  %v2615_v9 = vsub.s32 4, %v250_v1  ;;  %s1796_s20 = sld [smem:[#allocation2 + $0x7]]  ;;  %s1775_s21 = sld [smem:[#allocation2 + $0x8]] }
  0x48   :  { %s1776_s22 = sld [smem:[#allocation2 + $0xa]]  ;;  %s1805_s23 = sld [smem:[#allocation2 + $0x9]] }
  0x49   :  { %v82_v7 = vstv %s81_s15  ;;  %v92_v21 = vstv %s1748_s16  ;;  %s1806_s24 = sld [smem:[#allocation2 + $0xb]]  ;;  %s2522_s26 = smov 32  }
  0x4a   :  { %v83_v13 = vmul.f32 %v82_v7, %v2603_v2  ;;  %v84_v14 = vmul.f32 %v82_v7, %v2605_v3  ;;  %v85_v15 = vmul.f32 %v82_v7, %v2607_v4  ;;  %v86_v16 = vmul.f32 %v82_v7, %v2609_v5  ;;  %s2523_s27 = smov [#allocation10]  }
  0x4b   :  { %v87_v17 = vmul.f32 %v82_v7, %v2611_v6  ;;  %v88_v18 = vmul.f32 %v82_v7, %v2617_v10  ;;  %v89_v19 = vmul.f32 %v82_v7, %v2619_v11  ;;  %v90_v20 = vmul.f32 %v82_v7, %v2621_v12  ;;  %s1737_s28 = sshll.u32 %s2523_s27, 4  ;;  %s1738_s28 = int_to_ptr.vmem [resolvable:$true] %s1737_s28 }
  0x4c   :  { %v142_v22 = vstv %s1757_s2  ;;  %v192_v23 = vstv %s1766_s17  ;;  %v2631_v24 = vstv %s1777_s18  ;;  %v93_v25 = vmul.f32 %v92_v21, %v2603_v2  ;;  %s2480_s29 = scalar_lea.vmem %s1738_s28, 128  ;;  %p2485_p0 = scmp.lt.s32.totalorder %s1738_s28, %s1738_s28 }
  0x4d   :  { %v94_v26 = vmul.f32 %v92_v21, %v2605_v3  ;;  %v95_v27 = vmul.f32 %v92_v21, %v2607_v4  ;;  %v96_v28 = vmul.f32 %v92_v21, %v2609_v5  ;;  %v97_v29 = vmul.f32 %v92_v21, %v2611_v6  ;;  %p2481_p13 = scmp.ne.s32.totalorder %s1738_s28, %s2480_s29  ;;  %p2486_p1 = scmp.lt.s32.totalorder %s2480_s29, %s2480_s29 }
  0x4e   :  { %v98_v30 = vmul.f32 %v92_v21, %v2617_v10  ;;  %v99_v31 = vmul.f32 %v92_v21, %v2619_v11  ;;  %v100_v32 = vmul.f32 %v92_v21, %v2621_v12  ;;  %v1749_v33 = vrot.slane %v93_v25, 9 }
  0x4f   :  { %v1750_v34 = vrot.slane %v94_v26, 9  ;;  %v1751_v35 = vrot.slane %v95_v27, 9  ;;  %v1752_v36 = vrot.slane %v96_v28, 9  ;;  %v1753_v37 = vrot.slane %v97_v29, 9  ;;  %p2487_p2 = por %p2486_p1, %p2485_p0 }
  0x50   :  { %v1754_v38 = vrot.slane %v98_v30, 9  ;;  %v1755_v39 = vrot.slane %v99_v31, 9  ;;  %v1756_v40 = vrot.slane %v100_v32, 9  ;;  %v133_v41 = vadd.f32 %v1749_v33, %v83_v13 }
  0x51   :  { %v134_v42 = vadd.f32 %v1750_v34, %v84_v14  ;;  %v135_v43 = vadd.f32 %v1751_v35, %v85_v15  ;;  %v136_v44 = vadd.f32 %v1752_v36, %v86_v16  ;;  %v137_v45 = vadd.f32 %v1753_v37, %v87_v17  ;;  %p2488_p3 = pnand %p2487_p2, %p2481_p13 }
  0x52   :  { %v138_v46 = vadd.f32 %v1754_v38, %v88_v18  ;;  %v139_v47 = vadd.f32 %v1755_v39, %v89_v19  ;;  %v140_v48 = vadd.f32 %v1756_v40, %v90_v20  ;;  %v143_v49 = vmul.f32 %v142_v22, %v2603_v2 }
  0x53   :  { %v144_v50 = vmul.f32 %v142_v22, %v2605_v3  ;;  %v145_v51 = vmul.f32 %v142_v22, %v2607_v4  ;;  %v146_v52 = vmul.f32 %v142_v22, %v2609_v5  ;;  %v147_v53 = vmul.f32 %v142_v22, %v2611_v6 }
  0x54   :  { %v148_v54 = vmul.f32 %v142_v22, %v2617_v10  ;;  %v149_v55 = vmul.f32 %v142_v22, %v2619_v11  ;;  %v150_v56 = vmul.f32 %v142_v22, %v2621_v12  ;;  %v1758_v57 = vrot.slane %v143_v49, 10 }
  0x55   :  { %v1759_v58 = vrot.slane %v144_v50, 10  ;;  %v1760_v59 = vrot.slane %v145_v51, 10  ;;  %v1761_v60 = vrot.slane %v146_v52, 10  ;;  %v1762_v61 = vrot.slane %v147_v53, 10 }
  0x56   :  { %v1763_v62 = vrot.slane %v148_v54, 10  ;;  %v1764_v63 = vrot.slane %v149_v55, 10  ;;  %v1765_v1 = vrot.slane %v150_v56, 10  ;;  %v183_v7 = vadd.f32 %v1758_v57, %v133_v41 }
  0x57   :  { %v184_v13 = vadd.f32 %v1759_v58, %v134_v42  ;;  %v185_v14 = vadd.f32 %v1760_v59, %v135_v43  ;;  %v186_v15 = vadd.f32 %v1761_v60, %v136_v44  ;;  %v187_v16 = vadd.f32 %v1762_v61, %v137_v45 }
  0x58   :  { %v188_v17 = vadd.f32 %v1763_v62, %v138_v46  ;;  %v189_v18 = vadd.f32 %v1764_v63, %v139_v47  ;;  %v190_v19 = vadd.f32 %v1765_v1, %v140_v48  ;;  %v193_v20 = vmul.f32 %v192_v23, %v2603_v2 }
  0x59   :  { %v194_v21 = vmul.f32 %v192_v23, %v2605_v3  ;;  %v195_v22 = vmul.f32 %v192_v23, %v2607_v4  ;;  %v196_v25 = vmul.f32 %v192_v23, %v2609_v5  ;;  %v197_v26 = vmul.f32 %v192_v23, %v2611_v6 }
  0x5a   :  { %v198_v27 = vmul.f32 %v192_v23, %v2617_v10  ;;  %v199_v28 = vmul.f32 %v192_v23, %v2619_v11  ;;  %v200_v29 = vmul.f32 %v192_v23, %v2621_v12  ;;  %v1767_v30 = vrot.slane %v193_v20, 11 }
  0x5b   :  { %v1768_v31 = vrot.slane %v194_v21, 11  ;;  %v1769_v32 = vrot.slane %v195_v22, 11  ;;  %v1770_v33 = vrot.slane %v196_v25, 11  ;;  %v1771_v34 = vrot.slane %v197_v26, 11 }
  0x5c   :  { %v1772_v35 = vrot.slane %v198_v27, 11  ;;  %v1773_v36 = vrot.slane %v199_v28, 11  ;;  %v1774_v37 = vrot.slane %v200_v29, 11  ;;  %v2657_v38 = vadd.f32 %v1767_v30, %v183_v7 }
  0x5d   :  { %v2659_v39 = vadd.f32 %v1768_v31, %v184_v13  ;;  %v2661_v40 = vadd.f32 %v1769_v32, %v185_v14  ;;  %v2663_v41 = vadd.f32 %v1770_v33, %v186_v15  ;;  %v2665_v23 = vadd.f32 %v1771_v34, %v187_v16 }
  0x5e   :  { %v2667_v42 = vadd.f32 %v1772_v35, %v188_v17  ;;  %v2669_v43 = vadd.f32 %v1773_v36, %v189_v18  ;;  %v2671_v44 = vadd.f32 %v1774_v37, %v190_v19  ;;  %v252_v45 = vrot.slane %v2657_v38, %v2613_v8 }
  0x5f   :  { %v256_v46 = vrot.slane %v2657_v38, %v2615_v9  ;;  %v260_v47 = vrot.slane %v2659_v39, %v2613_v8  ;;  %v264_v48 = vrot.slane %v2659_v39, %v2615_v9  ;;  %v268_v49 = vrot.slane %v2661_v40, %v2613_v8 }
  0x60   :  { %v272_v50 = vrot.slane %v2661_v40, %v2615_v9  ;;  %v276_v51 = vrot.slane %v2663_v41, %v2613_v8  ;;  %v280_v52 = vrot.slane %v2663_v41, %v2615_v9  ;;  %v284_v53 = vrot.slane %v2665_v23, %v2613_v8 }
  0x61   :  { %v288_v54 = vrot.slane %v2665_v23, %v2615_v9  ;;  %v292_v55 = vrot.slane %v2667_v42, %v2613_v8  ;;  %v296_v56 = vrot.slane %v2667_v42, %v2615_v9  ;;  %v300_v57 = vrot.slane %v2669_v43, %v2613_v8 }
  0x62   :  { %v304_v58 = vrot.slane %v2669_v43, %v2615_v9  ;;  %v308_v59 = vrot.slane %v2671_v44, %v2613_v8  ;;  %v312_v60 = vrot.slane %v2671_v44, %v2615_v9  ;;  %v314_v61 = vsel %vm313_vm0, %v260_v47, %v252_v45 }
  0x63   :  { %v327_v62 = vsel %vm313_vm0, %v264_v48, %v256_v46  ;;  %v500_v63 = vmul.f32 %v2631_v24, %v2603_v2  ;;  %v501_v1 = vmul.f32 %v2631_v24, %v2605_v3  ;;  %v316_v7 = vsel %vm315_vm1, %v268_v49, %v314_v61 }
  0x64   :  { %v328_v13 = vsel %vm315_vm1, %v272_v50, %v327_v62  ;;  %v502_v14 = vmul.f32 %v2631_v24, %v2607_v4  ;;  %v503_v15 = vmul.f32 %v2631_v24, %v2609_v5  ;;  %v318_v16 = vsel %vm317_vm2, %v276_v51, %v316_v7 }
  0x65   :  { %v329_v17 = vsel %vm317_vm2, %v280_v52, %v328_v13  ;;  %v504_v18 = vmul.f32 %v2631_v24, %v2611_v6  ;;  %v505_v19 = vmul.f32 %v2631_v24, %v2617_v10  ;;  %v320_v20 = vsel %vm319_vm3, %v284_v53, %v318_v16 }
  0x66   :  { %v330_v21 = vsel %vm319_vm3, %v288_v54, %v329_v17  ;;  %v506_v22 = vmul.f32 %v2631_v24, %v2619_v11  ;;  %v507_v25 = vmul.f32 %v2631_v24, %v2621_v12  ;;  %v322_v26 = vsel %vm321_vm4, %v292_v55, %v320_v20 }
  0x67   :  { %v331_v27 = vsel %vm321_vm4, %v296_v56, %v330_v21  ;;  %v509_v28 = vstv %s2681_s3  ;;  %v559_v29 = vstv %s2683_s19  ;;  %v324_v30 = vsel %vm323_vm5, %v300_v57, %v322_v26 }
  0x68   :  { %v332_v31 = vsel %vm323_vm5, %v304_v58, %v331_v27  ;;  %v510_v32 = vmul.f32 %v509_v28, %v2603_v2  ;;  %v511_v33 = vmul.f32 %v509_v28, %v2605_v3  ;;  %v326_v34 = vsel %vm325_vm6, %v308_v59, %v324_v30 }
  0x69   :  { %v333_v35 = vsel %vm325_vm6, %v312_v60, %v332_v31  ;;  %v512_v24 = vmul.f32 %v509_v28, %v2607_v4  ;;  %v513_v36 = vmul.f32 %v509_v28, %v2609_v5  ;;  %v514_v45 = vmul.f32 %v509_v28, %v2611_v6 }
  0x6a   :  { %v336_v37 = vadd.f32 %v333_v35, %v326_v34  ;;  %v515_v46 = vmul.f32 %v509_v28, %v2617_v10  ;;  %v516_v47 = vmul.f32 %v509_v28, %v2619_v11  ;;  %v517_v48 = vmul.f32 %v509_v28, %v2621_v12 }
  0x6b   :  { %v1779_v49 = vrot.slane %v510_v32, 9  ;;  %v1780_v50 = vrot.slane %v511_v33, 9  ;;  %v1781_v51 = vrot.slane %v512_v24, 9  ;;  %v1782_v52 = vrot.slane %v513_v36, 9 }
  0x6c   :  { %337 = vadd.xlane.f32.xlu0 %v336_v37  ;;  %v1783_v53 = vrot.slane %v514_v45, 9  ;;  %v1784_v54 = vrot.slane %v515_v46, 9  ;;  %v1785_v55 = vrot.slane %v516_v47, 9  ;;  %v1786_v56 = vrot.slane %v517_v48, 9 }
  0x6d   :  { %v550_v57 = vadd.f32 %v1779_v49, %v500_v63  ;;  %v551_v58 = vadd.f32 %v1780_v50, %v501_v1  ;;  %v552_v59 = vadd.f32 %v1781_v51, %v502_v14  ;;  %v553_v60 = vadd.f32 %v1782_v52, %v503_v15 }
  0x6e   :  { %v554_v61 = vadd.f32 %v1783_v53, %v504_v18  ;;  %v555_v62 = vadd.f32 %v1784_v54, %v505_v19  ;;  %v556_v7 = vadd.f32 %v1785_v55, %v506_v22  ;;  %v557_v13 = vadd.f32 %v1786_v56, %v507_v25 }
  0x6f   :  { %v560_v16 = vmul.f32 %v559_v29, %v2603_v2  ;;  %v561_v17 = vmul.f32 %v559_v29, %v2605_v3  ;;  %v562_v20 = vmul.f32 %v559_v29, %v2607_v4  ;;  %v563_v21 = vmul.f32 %v559_v29, %v2609_v5 }
  0x70   :  { %v564_v26 = vmul.f32 %v559_v29, %v2611_v6  ;;  %v565_v63 = vmul.f32 %v559_v29, %v2617_v10  ;;  %v566_v1 = vmul.f32 %v559_v29, %v2619_v11  ;;  %v567_v14 = vmul.f32 %v559_v29, %v2621_v12 }
  0x71   :  { %v1788_v15 = vrot.slane %v560_v16, 10  ;;  %v1789_v18 = vrot.slane %v561_v17, 10  ;;  %v1790_v19 = vrot.slane %v562_v20, 10  ;;  %v1791_v22 = vrot.slane %v563_v21, 10 }
  0x72   :  { %v1792_v25 = vrot.slane %v564_v26, 10  ;;  %v1793_v27 = vrot.slane %v565_v63, 10  ;;  %v1794_v28 = vrot.slane %v566_v1, 10  ;;  %v1795_v30 = vrot.slane %v567_v14, 10 }
  0x73   :  { %v600_v31 = vadd.f32 %v1788_v15, %v550_v57  ;;  %v601_v32 = vadd.f32 %v1789_v18, %v551_v58  ;;  %v602_v33 = vadd.f32 %v1790_v19, %v552_v59  ;;  %v603_v34 = vadd.f32 %v1791_v22, %v553_v60 }
  0x74   :  { %v604_v35 = vadd.f32 %v1792_v25, %v554_v61  ;;  %v605_v24 = vadd.f32 %v1793_v27, %v555_v62  ;;  %v606_v36 = vadd.f32 %v1794_v28, %v556_v7  ;;  %v607_v37 = vadd.f32 %v1795_v30, %v557_v13 }
  0x75   :  { %v609_v45 = vstv %s1796_s20 }
  0x76   :  { %v610_v46 = vmul.f32 %v609_v45, %v2603_v2  ;;  %v611_v29 = vmul.f32 %v609_v45, %v2605_v3  ;;  %v612_v47 = vmul.f32 %v609_v45, %v2607_v4  ;;  %v613_v48 = vmul.f32 %v609_v45, %v2609_v5 }
  0x77   :  { %v614_v49 = vmul.f32 %v609_v45, %v2611_v6  ;;  %v615_v50 = vmul.f32 %v609_v45, %v2617_v10  ;;  %v616_v51 = vmul.f32 %v609_v45, %v2619_v11  ;;  %v617_v52 = vmul.f32 %v609_v45, %v2621_v12 }
  0x78   :  { %v1797_v53 = vrot.slane %v610_v46, 11  ;;  %v1798_v54 = vrot.slane %v611_v29, 11  ;;  %v1799_v55 = vrot.slane %v612_v47, 11  ;;  %v1800_v56 = vrot.slane %v613_v48, 11 }
  0x79   :  { %v1801_v57 = vrot.slane %v614_v49, 11  ;;  %v1802_v2 = vrot.slane %v615_v50, 11  ;;  %v1803_v58 = vrot.slane %v616_v51, 11  ;;  %v1804_v3 = vrot.slane %v617_v52, 11 }
  0x7a   :  { %v2765_v59 = vadd.f32 %v1797_v53, %v600_v31  ;;  %v2767_v4 = vadd.f32 %v1798_v54, %v601_v32  ;;  %v2769_v5 = vadd.f32 %v1799_v55, %v602_v33  ;;  %v2771_v6 = vadd.f32 %v1800_v56, %v603_v34 }
  0x7b   :  { %v2773_v10 = vadd.f32 %v1801_v57, %v604_v35  ;;  %v2775_v11 = vadd.f32 %v1802_v2, %v605_v24  ;;  %v2785_v7 = vadd.f32 %v1803_v58, %v606_v36  ;;  %v2791_v17 = vadd.f32 %v1804_v3, %v607_v37 }
  0x7c   :  { %v669_v12 = vrot.slane %v2765_v59, %v2613_v8  ;;  %v673_v60 = vrot.slane %v2765_v59, %v2615_v9  ;;  %v677_v61 = vrot.slane %v2767_v4, %v2613_v8  ;;  %v681_v62 = vrot.slane %v2767_v4, %v2615_v9 }
  0x7d   :  { %v685_v13 = vrot.slane %v2769_v5, %v2613_v8  ;;  %v689_v16 = vrot.slane %v2769_v5, %v2615_v9  ;;  %v693_v20 = vrot.slane %v2771_v6, %v2613_v8  ;;  %v697_v21 = vrot.slane %v2771_v6, %v2615_v9 }
  0x7e   :  { %v701_v26 = vrot.slane %v2773_v10, %v2613_v8  ;;  %v705_v63 = vrot.slane %v2773_v10, %v2615_v9  ;;  %v709_v1 = vrot.slane %v2775_v11, %v2613_v8  ;;  %v713_v14 = vrot.slane %v2775_v11, %v2615_v9 }
  0x7f   :  { %v730_v15 = vsel %vm313_vm0, %v677_v61, %v669_v12  ;;  %v737_v18 = vsel %vm313_vm0, %v681_v62, %v673_v60  ;;  %v717_v19 = vrot.slane %v2785_v7, %v2613_v8  ;;  %v721_v22 = vrot.slane %v2785_v7, %v2615_v9 }
  0x80   :  { %v731_v25 = vsel %vm315_vm1, %v685_v13, %v730_v15  ;;  %v738_v27 = vsel %vm315_vm1, %v689_v16, %v737_v18  ;;  %v725_v28 = vrot.slane %v2791_v17, %v2613_v8  ;;  %v729_v30 = vrot.slane %v2791_v17, %v2615_v9 }
  0x81   :  { %v732_v31 = vsel %vm317_vm2, %v693_v20, %v731_v25  ;;  %v739_v32 = vsel %vm317_vm2, %v697_v21, %v738_v27 }
  0x82   :  { %v733_v33 = vsel %vm319_vm3, %v701_v26, %v732_v31  ;;  %v740_v34 = vsel %vm319_vm3, %v705_v63, %v739_v32 }
  0x83   :  { %v734_v35 = vsel %vm321_vm4, %v709_v1, %v733_v33  ;;  %v741_v24 = vsel %vm321_vm4, %v713_v14, %v740_v34 }
  0x84   :  { %v735_v36 = vsel %vm323_vm5, %v717_v19, %v734_v35  ;;  %v742_v37 = vsel %vm323_vm5, %v721_v22, %v741_v24 }
  0x85   :  { %v736_v45 = vsel %vm325_vm6, %v725_v28, %v735_v36  ;;  %v743_v46 = vsel %vm325_vm6, %v729_v30, %v742_v37 }
  0x86   :  { %v746_v29 = vadd.f32 %v743_v46, %v736_v45 }
  0x88   :  { %747 = vadd.xlane.f32.xlu0 %v746_v29 }
  0xf9   :  { %v338_v47 = vpop.xlane.xlu0 %337 }
  0xfa   :  { %v339_v48 = vrot.slane %v338_v47, 4 }
  0xfc   :  { %v340_v49 = vadd.f32 %v339_v48, %v338_v47 }
  0xfe   :  { %v341_v50 = vrot.slane %v340_v49, 2 }
 0x100   :  { %v342_v51 = vadd.f32 %v341_v50, %v340_v49 }
 0x102   :  { %v343_v52 = vrot.slane %v342_v51, 1 }
 0x104   :  { %v344_v53 = vadd.f32 %v343_v52, %v342_v51 }
 0x106   :  { %v345_v54 = vmul.f32 0.00048828125, %v344_v53 }
 0x108   :  { %v2828_v55 = vsub.f32 %v2657_v38, %v345_v54  ;;  %v2831_v56 = vsub.f32 %v2659_v39, %v345_v54  ;;  %v2834_v57 = vsub.f32 %v2661_v40, %v345_v54  ;;  %v2837_v2 = vsub.f32 %v2663_v41, %v345_v54 }
 0x109   :  { %v2840_v58 = vsub.f32 %v2665_v23, %v345_v54  ;;  %v2843_v3 = vsub.f32 %v2667_v42, %v345_v54  ;;  %v2852_v40 = vsub.f32 %v2669_v43, %v345_v54  ;;  %v2855_v41 = vsub.f32 %v2671_v44, %v345_v54 }
 0x10a   :  { %v354_v12 = vmul.f32 %v2828_v55, %v2828_v55  ;;  %v355_v38 = vmul.f32 %v2831_v56, %v2831_v56  ;;  %v356_v39 = vmul.f32 %v2834_v57, %v2834_v57  ;;  %v357_v23 = vmul.f32 %v2837_v2, %v2837_v2 }
 0x10b   :  { %v358_v13 = vmul.f32 %v2840_v58, %v2840_v58  ;;  %v359_v44 = vmul.f32 %v2843_v3, %v2843_v3  ;;  %v360_v20 = vmul.f32 %v2852_v40, %v2852_v40  ;;  %v361_v21 = vmul.f32 %v2855_v41, %v2855_v41 }
 0x10c   :  { %v373_v42 = vrot.slane %v354_v12, %v2613_v8  ;;  %v377_v60 = vrot.slane %v354_v12, %v2615_v9  ;;  %v381_v61 = vrot.slane %v355_v38, %v2613_v8  ;;  %v385_v62 = vrot.slane %v355_v38, %v2615_v9 }
 0x10d   :  { %v389_v43 = vrot.slane %v356_v39, %v2613_v8  ;;  %v393_v16 = vrot.slane %v356_v39, %v2615_v9  ;;  %v397_v26 = vrot.slane %v357_v23, %v2613_v8  ;;  %v401_v63 = vrot.slane %v357_v23, %v2615_v9 }
 0x10e   :  { %v434_v1 = vsel %vm313_vm0, %v381_v61, %v373_v42  ;;  %v441_v14 = vsel %vm313_vm0, %v385_v62, %v377_v60  ;;  %v405_v15 = vrot.slane %v358_v13, %v2613_v8  ;;  %v409_v18 = vrot.slane %v358_v13, %v2615_v9 }
 0x10f   :  { %v435_v19 = vsel %vm315_vm1, %v389_v43, %v434_v1  ;;  %v442_v22 = vsel %vm315_vm1, %v393_v16, %v441_v14  ;;  %v413_v25 = vrot.slane %v359_v44, %v2613_v8  ;;  %v417_v27 = vrot.slane %v359_v44, %v2615_v9 }
 0x110   :  { %v436_v28 = vsel %vm317_vm2, %v397_v26, %v435_v19  ;;  %v443_v30 = vsel %vm317_vm2, %v401_v63, %v442_v22  ;;  %v421_v31 = vrot.slane %v360_v20, %v2613_v8  ;;  %v425_v32 = vrot.slane %v360_v20, %v2615_v9 }
 0x111   :  { %v437_v33 = vsel %vm319_vm3, %v405_v15, %v436_v28  ;;  %v444_v34 = vsel %vm319_vm3, %v409_v18, %v443_v30  ;;  %v429_v35 = vrot.slane %v361_v21, %v2613_v8  ;;  %v433_v24 = vrot.slane %v361_v21, %v2615_v9 }
 0x112   :  { %v438_v36 = vsel %vm321_vm4, %v413_v25, %v437_v33  ;;  %v445_v37 = vsel %vm321_vm4, %v417_v27, %v444_v34 }
 0x113   :  { %v439_v45 = vsel %vm323_vm5, %v421_v31, %v438_v36  ;;  %v446_v46 = vsel %vm323_vm5, %v425_v32, %v445_v37 }
 0x114   :  { %v440_v47 = vsel %vm325_vm6, %v429_v35, %v439_v45  ;;  %v447_v48 = vsel %vm325_vm6, %v433_v24, %v446_v46 }
 0x115   :  { %v748_v29 = vpop.xlane.xlu0 %747  ;;  %v450_v50 = vadd.f32 %v447_v48, %v440_v47 }
 0x116   :  { %v749_v49 = vrot.slane %v748_v29, 4 }
 0x117   :  { %451 = vadd.xlane.f32.xlu1 %v450_v50 }
 0x118   :  { %v750_v51 = vadd.f32 %v749_v49, %v748_v29 }
 0x11a   :  { %v751_v52 = vrot.slane %v750_v51, 2 }
 0x11c   :  { %v752_v53 = vadd.f32 %v751_v52, %v750_v51  ;;  %v1980_v51 = vld [vmem:[#allocation7 + $0x40] sm:$0xff]  }
 0x11d   :  { %2239 = vmatprep.subr.bf16.mxu0 %v1980_v51  ;;  %v1814_v52 = vld [vmem:[#allocation7] sm:$0xff]  }
 0x11e   :  { %v753_v54 = vrot.slane %v752_v53, 1  ;;  %2241 = vmatpush3.bf16.msra.mxu0 %v1814_v52 }
 0x120   :  { %v754_v12 = vadd.f32 %v753_v54, %v752_v53  ;;  %v1981_v53 = vld [vmem:[#allocation7 + $0x48] sm:$0xff]  }
 0x121   :  { %2243 = vmatprep.subr.bf16.mxu0 %v1981_v53  ;;  %v1973_v54 = vld [vmem:[#allocation7 + $0x8] sm:$0xff]  }
 0x122   :  { %v755_v38 = vmul.f32 0.00048828125, %v754_v12  ;;  %v1996_v12 = vld [vmem:[#allocation7 + $0xc0] sm:$0xff]   ;;  %2245 = vmatpush3.bf16.msra.mxu0 %v1973_v54 }
 0x123   :  { %2271 = vmatprep.subr.bf16.mxu1 %v1996_v12 }
 0x124   :  { %v2898_v39 = vsub.f32 %v2765_v59, %v755_v38  ;;  %v2901_v23 = vsub.f32 %v2767_v4, %v755_v38  ;;  %v2904_v42 = vsub.f32 %v2769_v5, %v755_v38  ;;  %v2907_v60 = vsub.f32 %v2771_v6, %v755_v38 }
 0x125   :  { %v2910_v61 = vsub.f32 %v2773_v10, %v755_v38  ;;  %v2913_v62 = vsub.f32 %v2775_v11, %v755_v38  ;;  %v2916_v13 = vsub.f32 %v2785_v7, %v755_v38  ;;  %v2919_v59 = vsub.f32 %v2791_v17, %v755_v38  ;;  %v1988_v38 = vld [vmem:[#allocation7 + $0x80] sm:$0xff]  }
 0x126   :  { %v764_v4 = vmul.f32 %v2898_v39, %v2898_v39  ;;  %v765_v5 = vmul.f32 %v2901_v23, %v2901_v23  ;;  %v766_v6 = vmul.f32 %v2904_v42, %v2904_v42  ;;  %v767_v10 = vmul.f32 %v2907_v60, %v2907_v60  ;;  %2273 = vmatpush3.bf16.msra.mxu1 %v1988_v38 }
 0x127   :  { %v768_v11 = vmul.f32 %v2910_v61, %v2910_v61  ;;  %v769_v7 = vmul.f32 %v2913_v62, %v2913_v62  ;;  %v770_v20 = vmul.f32 %v2916_v13, %v2916_v13  ;;  %v771_v63 = vmul.f32 %v2919_v59, %v2919_v59 }
 0x128   :  { %v783_v17 = vrot.slane %v764_v4, %v2613_v8  ;;  %v787_v43 = vrot.slane %v764_v4, %v2615_v9  ;;  %v791_v16 = vrot.slane %v765_v5, %v2613_v8  ;;  %v795_v44 = vrot.slane %v765_v5, %v2615_v9  ;;  %v1982_v4 = vld [vmem:[#allocation7 + $0x50] sm:$0xff]  }
 0x129   :  { %v799_v21 = vrot.slane %v766_v6, %v2613_v8  ;;  %v803_v26 = vrot.slane %v766_v6, %v2615_v9  ;;  %v807_v1 = vrot.slane %v767_v10, %v2613_v8  ;;  %v811_v14 = vrot.slane %v767_v10, %v2615_v9  ;;  %2247 = vmatprep.subr.bf16.mxu0 %v1982_v4  ;;  %v1974_v5 = vld [vmem:[#allocation7 + $0x10] sm:$0xff]   ;;  %v1997_v6 = vld [vmem:[#allocation7 + $0xc8] sm:$0xff]  }
 0x12a   :  { %v815_v15 = vrot.slane %v768_v11, %v2613_v8  ;;  %v819_v18 = vrot.slane %v768_v11, %v2615_v9  ;;  %v823_v19 = vrot.slane %v769_v7, %v2613_v8  ;;  %v827_v22 = vrot.slane %v769_v7, %v2615_v9  ;;  %v1989_v10 = vld [vmem:[#allocation7 + $0x88] sm:$0xff]   ;;  %2249 = vmatpush3.bf16.msra.mxu0 %v1974_v5  ;;  %v1983_v11 = vld [vmem:[#allocation7 + $0x58] sm:$0xff]   ;;  %v1998_v7 = vld [vmem:[#allocation7 + $0xd0] sm:$0xff]  }
 0x12b   :  { %v844_v25 = vsel %vm313_vm0, %v791_v16, %v783_v17  ;;  %v851_v27 = vsel %vm313_vm0, %v795_v44, %v787_v43  ;;  %v831_v28 = vrot.slane %v770_v20, %v2613_v8  ;;  %v835_v30 = vrot.slane %v770_v20, %v2615_v9  ;;  %2275 = vmatprep.subr.bf16.mxu1 %v1997_v6  ;;  %v1975_v17 = vld [vmem:[#allocation7 + $0x18] sm:$0xff]   ;;  %v1990_v43 = vld [vmem:[#allocation7 + $0x90] sm:$0xff]   ;;  %v1984_v16 = vld [vmem:[#allocation7 + $0x60] sm:$0xff]  }
 0x12c   :  { %v845_v31 = vsel %vm315_vm1, %v799_v21, %v844_v25  ;;  %v852_v32 = vsel %vm315_vm1, %v803_v26, %v851_v27  ;;  %v839_v33 = vrot.slane %v771_v63, %v2613_v8  ;;  %v843_v34 = vrot.slane %v771_v63, %v2615_v9  ;;  %2277 = vmatpush3.bf16.msra.mxu1 %v1989_v10  ;;  %v1999_v44 = vld [vmem:[#allocation7 + $0xd8] sm:$0xff]   ;;  %v1976_v20 = vld [vmem:[#allocation7 + $0x20] sm:$0xff]   ;;  %v1985_v26 = vld [vmem:[#allocation7 + $0x68] sm:$0xff]  }
 0x12d   :  { %v846_v35 = vsel %vm317_vm2, %v807_v1, %v845_v31  ;;  %v853_v24 = vsel %vm317_vm2, %v811_v14, %v852_v32  ;;  %2251 = vmatprep.subr.bf16.mxu0 %v1983_v11  ;;  %2279 = vmatprep.subr.bf16.mxu1 %v1998_v7  ;;  %v1991_v21 = vld [vmem:[#allocation7 + $0x98] sm:$0xff]   ;;  %v2000_v63 = vld [vmem:[#allocation7 + $0xe0] sm:$0xff]   ;;  %v1977_v1 = vld [vmem:[#allocation7 + $0x28] sm:$0xff]   ;;  %v2518_v32 = vmov 0.0|0.0  }
 0x12e   :  { %v847_v36 = vsel %vm319_vm3, %v815_v15, %v846_v35  ;;  %v854_v37 = vsel %vm319_vm3, %v819_v18, %v853_v24  ;;  %2253 = vmatpush3.bf16.msra.mxu0 %v1975_v17  ;;  %v1992_v14 = vld [vmem:[#allocation7 + $0xa0] sm:$0xff]   ;;  %v1986_v15 = vld [vmem:[#allocation7 + $0x70] sm:$0xff]   ;;  %v2001_v18 = vld [vmem:[#allocation7 + $0xe8] sm:$0xff]  }
 0x12f   :  { %v848_v45 = vsel %vm321_vm4, %v823_v19, %v847_v36  ;;  %v855_v46 = vsel %vm321_vm4, %v827_v22, %v854_v37  ;;  %2255 = vmatprep.subr.bf16.mxu0 %v1984_v16  ;;  %v1978_v19 = vld [vmem:[#allocation7 + $0x30] sm:$0xff]   ;;  %v1993_v22 = vld [vmem:[#allocation7 + $0xa8] sm:$0xff]   ;;  %v1987_v25 = vld [vmem:[#allocation7 + $0x78] sm:$0xff]  }
 0x130   :  { %v849_v29 = vsel %vm323_vm5, %v831_v28, %v848_v45  ;;  %v856_v47 = vsel %vm323_vm5, %v835_v30, %v855_v46  ;;  %2281 = vmatpush3.bf16.msra.mxu1 %v1990_v43  ;;  %v2002_v27 = vld [vmem:[#allocation7 + $0xf0] sm:$0xff]   ;;  %v1979_v28 = vld [vmem:[#allocation7 + $0x38] sm:$0xff]  }
 0x131   :  { %v850_v48 = vsel %vm325_vm6, %v839_v33, %v849_v29  ;;  %v857_v49 = vsel %vm325_vm6, %v843_v34, %v856_v47  ;;  %2283 = vmatprep.subr.bf16.mxu1 %v1999_v44  ;;  %v1994_v30 = vld [vmem:[#allocation7 + $0xb0] sm:$0xff]   ;;  %v2003_v31 = vld [vmem:[#allocation7 + $0xf8] sm:$0xff]  }
 0x132   :  { %v860_v50 = vadd.f32 %v857_v49, %v850_v48  ;;  %2257 = vmatpush3.bf16.msra.mxu0 %v1976_v20  ;;  %v1995_v33 = vld [vmem:[#allocation7 + $0xb8] sm:$0xff]   ;;  %v471_v49 = vstv %s1775_s21 }
 0x133   :  { %2259 = vmatprep.subr.bf16.mxu0 %v1985_v26 }
 0x134   :  { %861 = vadd.xlane.f32.xlu1 %v860_v50  ;;  %2285 = vmatpush3.bf16.msra.mxu1 %v1991_v21  ;;  %v481_v50 = vstv %s1776_s22 }
 0x135   :  { %2287 = vmatprep.subr.bf16.mxu1 %v2000_v63 }
 0x136   :  { %2261 = vmatpush3.bf16.msra.mxu0 %v1977_v1 }
 0x137   :  { %2263 = vmatprep.subr.bf16.mxu0 %v1986_v15 }
 0x138   :  { %2289 = vmatpush3.bf16.msra.mxu1 %v1992_v14 }
 0x139   :  { %2291 = vmatprep.subr.bf16.mxu1 %v2001_v18 }
 0x13a   :  { %2265 = vmatpush3.bf16.msra.mxu0 %v1978_v19 }
 0x13b   :  { %2267 = vmatprep.subr.bf16.mxu0 %v1987_v25 }
 0x13c   :  { %2293 = vmatpush3.bf16.msra.mxu1 %v1993_v22 }
 0x13d   :  { %2295 = vmatprep.subr.bf16.mxu1 %v2002_v27 }
 0x13e   :  { %2269 = vmatpush3.bf16.msra.mxu0 %v1979_v28 }
 0x13f   :  { %2302 = vmatprep.subr.bf16.mxu0 %v2518_v32 }
 0x140   :  { %2297 = vmatpush3.bf16.msra.mxu1 %v1994_v30 }
 0x141   :  { %2299 = vmatprep.subr.bf16.mxu1 %v2003_v31 }
 0x144   :  { %2301 = vmatpush3.bf16.msra.mxu1 %v1995_v33 }
 0x145   :  { %2326 = vmatprep.subr.bf16.mxu1 %v2518_v32 }
 0x1a4   :  { %v452_v34 = vpop.xlane.xlu1 %451 }
 0x1a5   :  { %v453_v35 = vrot.slane %v452_v34, 4 }
 0x1a7   :  { %v454_v24 = vadd.f32 %v453_v35, %v452_v34 }
 0x1a9   :  { %v455_v36 = vrot.slane %v454_v24, 2 }
 0x1ab   :  { %v456_v37 = vadd.f32 %v455_v36, %v454_v24 }
 0x1ad   :  { %v457_v45 = vrot.slane %v456_v37, 1 }
 0x1af   :  { %v458_v46 = vadd.f32 %v457_v45, %v456_v37 }
 0x1b1   :  { %v459_v29 = vmul.f32 0.00048828125, %v458_v46 }
 0x1b3   :  { %v460_v47 = vadd.f32 1e-05, %v459_v29 }
 0x1b5   :  { %2388 = vrsqrt.f32 %v460_v47 }
 0x1bf   :  { %v2389_v48 = vpop.eup %2388 }
 0x1c0   :  { %v462_v51 = vmul.f32 %v2389_v48, %v2828_v55  ;;  %v463_v52 = vmul.f32 %v2389_v48, %v2831_v56  ;;  %v464_v53 = vmul.f32 %v2389_v48, %v2834_v57  ;;  %v465_v54 = vmul.f32 %v2389_v48, %v2837_v2 }
 0x1c1   :  { %v862_v12 = vpop.xlane.xlu1 %861  ;;  %v466_v38 = vmul.f32 %v2389_v48, %v2840_v58  ;;  %v467_v4 = vmul.f32 %v2389_v48, %v2843_v3  ;;  %v468_v5 = vmul.f32 %v2389_v48, %v2852_v40  ;;  %v469_v6 = vmul.f32 %v2389_v48, %v2855_v41 }
 0x1c2   :  { %v863_v10 = vrot.slane %v862_v12, 4  ;;  %v472_v11 = vmul.f32 %v471_v49, %v462_v51  ;;  %v473_v7 = vmul.f32 %v471_v49, %v463_v52  ;;  %v474_v17 = vmul.f32 %v471_v49, %v464_v53 }
 0x1c3   :  { %v475_v55 = vmul.f32 %v471_v49, %v465_v54  ;;  %v476_v43 = vmul.f32 %v471_v49, %v466_v38  ;;  %v477_v56 = vmul.f32 %v471_v49, %v467_v4  ;;  %v478_v16 = vmul.f32 %v471_v49, %v468_v5 }
 0x1c4   :  { %v864_v57 = vadd.f32 %v863_v10, %v862_v12  ;;  %v479_v44 = vmul.f32 %v471_v49, %v469_v6  ;;  %v482_v2 = vadd.f32 %v481_v50, %v472_v11  ;;  %v483_v20 = vadd.f32 %v481_v50, %v473_v7 }
 0x1c5   :  { %v484_v21 = vadd.f32 %v481_v50, %v474_v17  ;;  %v485_v58 = vadd.f32 %v481_v50, %v475_v55  ;;  %v486_v26 = vadd.f32 %v481_v50, %v476_v43  ;;  %v487_v3 = vadd.f32 %v481_v50, %v477_v56 }
 0x1c6   :  { %v865_v63 = vrot.slane %v864_v57, 2  ;;  %v488_v40 = vadd.f32 %v481_v50, %v478_v16  ;;  %v489_v1 = vadd.f32 %v481_v50, %v479_v44  ;;  %v490_v41 = vmax.f32 %v482_v2, 0.0  ;;  %v2004_v44 = vld [vmem:[#allocation7 + $0x100] sm:$0xff]  }
 0x1c7   :  { %v491_v14 = vmax.f32 %v483_v20, 0.0  ;;  %v492_v15 = vmax.f32 %v484_v21, 0.0  ;;  %v493_v18 = vmax.f32 %v485_v58, 0.0  ;;  %v494_v22 = vmax.f32 %v486_v26, 0.0  ;;  %v2005_v21 = vld [vmem:[#allocation7 + $0x108] sm:$0xff]   ;;  %v2006_v58 = vld [vmem:[#allocation7 + $0x110] sm:$0xff]  }
 0x1c8   :  { %v866_v19 = vadd.f32 %v865_v63, %v864_v57  ;;  %v495_v25 = vmax.f32 %v487_v3, 0.0  ;;  %v496_v27 = vmax.f32 %v488_v40, 0.0  ;;  %v924_v28 = vrot.slane %v490_v41, %v2615_v9 }
 0x1c9   :  { %v932_v30 = vrot.slane %v491_v14, %v2615_v9  ;;  %v940_v31 = vrot.slane %v492_v15, %v2615_v9  ;;  %v497_v34 = vmax.f32 %v489_v1, 0.0  ;;  %v948_v35 = vrot.slane %v493_v18, %v2615_v9 }
 0x1ca   :  { %v867_v33 = vrot.slane %v866_v19, 1  ;;  %v920_v36 = vrot.slane %v490_v41, %v2613_v8  ;;  %v928_v37 = vrot.slane %v491_v14, %v2613_v8  ;;  %v956_v46 = vrot.slane %v494_v22, %v2615_v9 }
 0x1cb   :  { %v988_v24 = vsel %vm313_vm0, %v932_v30, %v924_v28  ;;  %v936_v47 = vrot.slane %v492_v15, %v2613_v8  ;;  %v964_v48 = vrot.slane %v495_v25, %v2615_v9  ;;  %v972_v49 = vrot.slane %v496_v27, %v2615_v9 }
 0x1cc   :  { %v868_v45 = vadd.f32 %v867_v33, %v866_v19  ;;  %v989_v29 = vsel %vm315_vm1, %v940_v31, %v988_v24  ;;  %v944_v53 = vrot.slane %v493_v18, %v2613_v8  ;;  %v981_v54 = vsel %vm313_vm0, %v928_v37, %v920_v36 }
 0x1cd   :  { %v990_v50 = vsel %vm317_vm2, %v948_v35, %v989_v29  ;;  %v980_v12 = vrot.slane %v497_v34, %v2615_v9  ;;  %v952_v4 = vrot.slane %v494_v22, %v2613_v8  ;;  %v982_v5 = vsel %vm315_vm1, %v936_v47, %v981_v54  ;;  %v2008_v29 = vld [vmem:[#allocation7 + $0x120] sm:$0xff]  }
 0x1ce   :  { %v869_v51 = vmul.f32 0.00048828125, %v868_v45  ;;  %v991_v52 = vsel %vm319_vm3, %v956_v46, %v990_v50  ;;  %v960_v11 = vrot.slane %v495_v25, %v2613_v8  ;;  %v983_v7 = vsel %vm317_vm2, %v944_v53, %v982_v5 }
 0x1cf   :  { %v992_v38 = vsel %vm321_vm4, %v964_v48, %v991_v52  ;;  %v968_v55 = vrot.slane %v496_v27, %v2613_v8  ;;  %v984_v43 = vsel %vm319_vm3, %v952_v4, %v983_v7  ;;  %v976_v56 = vrot.slane %v497_v34, %v2613_v8 }
 0x1d0   :  { %v870_v6 = vadd.f32 1e-05, %v869_v51  ;;  %v993_v10 = vsel %vm323_vm5, %v972_v49, %v992_v38  ;;  %v985_v16 = vsel %vm321_vm4, %v960_v11, %v984_v43  ;;  %v2520_v20 = vmov 0.0  }
 0x1d1   :  { %v994_v17 = vsel %vm325_vm6, %v980_v12, %v993_v10  ;;  %v986_v57 = vsel %vm323_vm5, %v968_v55, %v985_v16  ;;  %v881_v3 = vstv %s1805_s23  ;;  %v891_v63 = vstv %s1806_s24 }
 0x1d2   :  { %2390 = vrsqrt.f32 %v870_v6  ;;  %1314 = vmatprep.mubr.f32.mxu0 %v994_v17  ;;  %v987_v2 = vsel %vm325_vm6, %v976_v56, %v986_v57  ;;  %v2009_v6 = vld [vmem:[#allocation7 + $0x128] sm:$0xff]  }
 0x1d3   :  { %1315 = vmatmul.mubr.f32.vlgmr.msra.gmra.mrb[0].mxu0 %v987_v2 }
 0x1d4   :  { %2304 = vmatpush3.bf16.msra.mxu0 %v2004_v44  ;;  %2165 = vmatprep.mubr.msk.f32.mxu0 %vm2519_vm7, %v2520_v20 }
 0x1d5   :  { %2305 = vmatprep.subr.bf16.mxu0 %v2518_v32 }
 0x1d8   :  { %2307 = vmatpush3.bf16.msra.mxu0 %v2005_v21 }
 0x1d9   :  { %2308 = vmatprep.subr.bf16.mxu0 %v2518_v32 }
 0x1dc   :  { %v2391_v26 = vpop.eup %2390  ;;  %2310 = vmatpush3.bf16.msra.mxu0 %v2006_v58 }
 0x1dd   :  { %v872_v40 = vmul.f32 %v2391_v26, %v2898_v39  ;;  %v873_v1 = vmul.f32 %v2391_v26, %v2901_v23  ;;  %v874_v41 = vmul.f32 %v2391_v26, %v2904_v42  ;;  %v875_v14 = vmul.f32 %v2391_v26, %v2907_v60  ;;  %2311 = vmatprep.subr.bf16.mxu0 %v2518_v32  ;;  %v2007_v39 = vld [vmem:[#allocation7 + $0x118] sm:$0xff]  }
 0x1de   :  { %v876_v15 = vmul.f32 %v2391_v26, %v2910_v61  ;;  %v877_v18 = vmul.f32 %v2391_v26, %v2913_v62  ;;  %v878_v19 = vmul.f32 %v2391_v26, %v2916_v13  ;;  %v879_v22 = vmul.f32 %v2391_v26, %v2919_v59 }
 0x1df   :  { %v882_v25 = vmul.f32 %v881_v3, %v872_v40  ;;  %v883_v27 = vmul.f32 %v881_v3, %v873_v1  ;;  %v884_v28 = vmul.f32 %v881_v3, %v874_v41  ;;  %v885_v30 = vmul.f32 %v881_v3, %v875_v14 }
 0x1e0   :  { %v886_v23 = vmul.f32 %v881_v3, %v876_v15  ;;  %v887_v42 = vmul.f32 %v881_v3, %v877_v18  ;;  %v888_v31 = vmul.f32 %v881_v3, %v878_v19  ;;  %v889_v60 = vmul.f32 %v881_v3, %v879_v22  ;;  %2313 = vmatpush3.bf16.msra.mxu0 %v2007_v39  ;;  %v2010_v3 = vld [vmem:[#allocation7 + $0x130] sm:$0xff]   ;;  %v2011_v19 = vld [vmem:[#allocation7 + $0x138] sm:$0xff]  }
 0x1e1   :  { %v892_v33 = vadd.f32 %v891_v63, %v882_v25  ;;  %v893_v61 = vadd.f32 %v891_v63, %v883_v27  ;;  %v894_v34 = vadd.f32 %v891_v63, %v884_v28  ;;  %v895_v62 = vadd.f32 %v891_v63, %v885_v30  ;;  %2314 = vmatprep.subr.bf16.mxu0 %v2518_v32  ;;  %v1807_v28 = vld [vmem:[#allocation9] ss:$0 sm:$0xff] }
 0x1e2   :  { %v896_v35 = vadd.f32 %v891_v63, %v886_v23  ;;  %v897_v13 = vadd.f32 %v891_v63, %v887_v42  ;;  %v898_v24 = vadd.f32 %v891_v63, %v888_v31  ;;  %v899_v59 = vadd.f32 %v891_v63, %v889_v60 }
 0x1e3   :  { %v900_v36 = vmax.f32 %v892_v33, 0.0  ;;  %v901_v37 = vmax.f32 %v893_v61, 0.0  ;;  %v902_v45 = vmax.f32 %v894_v34, 0.0  ;;  %v903_v46 = vmax.f32 %v895_v62, 0.0 }
 0x1e4   :  { %v904_v47 = vmax.f32 %v896_v35, 0.0  ;;  %v905_v48 = vmax.f32 %v897_v13, 0.0  ;;  %v906_v52 = vmax.f32 %v898_v24, 0.0  ;;  %v907_v53 = vmax.f32 %v899_v59, 0.0  ;;  %2316 = vmatpush3.bf16.msra.mxu0 %v2008_v29 }
 0x1e5   :  { %v1012_v49 = vrot.slane %v900_v36, %v2615_v9  ;;  %v1020_v50 = vrot.slane %v901_v37, %v2615_v9  ;;  %v1028_v51 = vrot.slane %v902_v45, %v2615_v9  ;;  %v1036_v54 = vrot.slane %v903_v46, %v2615_v9  ;;  %2317 = vmatprep.subr.bf16.mxu0 %v2518_v32 }
 0x1e6   :  { %v1008_v38 = vrot.slane %v900_v36, %v2613_v8  ;;  %v1016_v4 = vrot.slane %v901_v37, %v2613_v8  ;;  %v1024_v5 = vrot.slane %v902_v45, %v2613_v8  ;;  %v1044_v10 = vrot.slane %v904_v47, %v2615_v9 }
 0x1e7   :  { %v1076_v12 = vsel %vm313_vm0, %v1020_v50, %v1012_v49  ;;  %v1052_v7 = vrot.slane %v905_v48, %v2615_v9  ;;  %v1032_v55 = vrot.slane %v903_v46, %v2613_v8  ;;  %v1060_v56 = vrot.slane %v906_v52, %v2615_v9  ;;  %v1519_v49 = vld [vmem:[#allocation9 + $0x18] sm:$0xff] }
 0x1e8   :  { %v1077_v11 = vsel %vm315_vm1, %v1028_v51, %v1076_v12  ;;  %v1069_v43 = vsel %vm313_vm0, %v1016_v4, %v1008_v38  ;;  %v1040_v57 = vrot.slane %v904_v47, %v2613_v8  ;;  %2319 = vmatpush3.bf16.msra.mxu0 %v2009_v6  ;;  %v1068_v2 = vrot.slane %v907_v53, %v2615_v9  ;;  %v1520_v51 = vld [vmem:[#allocation9 + $0x20] sm:$0xff]  ;;  %v1523_v38 = vld [vmem:[#allocation9 + $0x38] sm:$0xff]  ;;  %v1525_v6 = vld [vmem:[#allocation9 + $0x48] sm:$0xff] }
 0x1e9   :  { %v1078_v17 = vsel %vm317_vm2, %v1036_v54, %v1077_v11  ;;  %v1070_v44 = vsel %vm315_vm1, %v1024_v5, %v1069_v43  ;;  %v1048_v58 = vrot.slane %v905_v48, %v2613_v8  ;;  %2320 = vmatprep.subr.bf16.mxu0 %v2518_v32  ;;  %v1056_v40 = vrot.slane %v906_v52, %v2613_v8  ;;  %v1518_v48 = vld [vmem:[#allocation9 + $0x10] sm:$0xff]  ;;  %v1524_v4 = vld [vmem:[#allocation9 + $0x40] sm:$0xff]  ;;  %v1529_v43 = vld [vmem:[#allocation9 + $0x68] sm:$0xff] }
 0x1ea   :  { %v1079_v16 = vsel %vm319_vm3, %v1044_v10, %v1078_v17  ;;  %v1071_v26 = vsel %vm317_vm2, %v1032_v55, %v1070_v44  ;;  %v1064_v14 = vrot.slane %v907_v53, %v2613_v8  ;;  %v908_v8 = vld [vmem:[%s3109_s4] sm:$0xff]  ;;  %s2521_s4 = smov 96   ;;  %v2330_v52 = vpack.c.bf16 %v1520_v51, %v1519_v49  ;;  %v1521_v53 = vld [vmem:[#allocation9 + $0x28] sm:$0xff]  ;;  %v1522_v54 = vld [vmem:[#allocation9 + $0x30] sm:$0xff] }
 0x1eb   :  { %v1080_v21 = vsel %vm321_vm4, %v1052_v7, %v1079_v16  ;;  %v1072_v1 = vsel %vm319_vm3, %v1040_v57, %v1071_v26  ;;  %v2333_v12 = vpack.c.bf16 %v1522_v54, %v1521_v53  ;;  %v2336_v5 = vpack.c.bf16 %v1524_v4, %v1523_v38  ;;  %v1526_v10 = vld [vmem:[#allocation9 + $0x50] sm:$0xff]  ;;  %v1527_v7 = vld [vmem:[#allocation9 + $0x58] sm:$0xff]  ;;  %v1528_v17 = vld [vmem:[#allocation9 + $0x60] sm:$0xff] }
 0x1ec   :  { %v1081_v63 = vsel %vm323_vm5, %v1060_v56, %v1080_v21  ;;  %v1073_v9 = vsel %vm321_vm4, %v1048_v58, %v1072_v1  ;;  %2322 = vmatpush3.bf16.msra.mxu0 %v2010_v3  ;;  %v2339_v11 = vpack.c.bf16 %v1526_v10, %v1525_v6  ;;  %v2342_v55 = vpack.c.bf16 %v1528_v17, %v1527_v7  ;;  %v1530_v56 = vld [vmem:[#allocation9 + $0x70] sm:$0xff]  ;;  %v1531_v57 = vld [vmem:[#allocation9 + $0x78] sm:$0xff]  ;;  %v1532_v44 = vld [vmem:[#allocation9 + $0x80] sm:$0xff] }
 0x1ed   :  { %v1082_v41 = vsel %vm325_vm6, %v1068_v2, %v1081_v63  ;;  %v1074_v15 = vsel %vm323_vm5, %v1056_v40, %v1073_v9  ;;  %2323 = vmatprep.subr.bf16.mxu0 %v2518_v32  ;;  %v2345_v16 = vpack.c.bf16 %v1530_v56, %v1529_v43  ;;  %v2348_v2 = vpack.c.bf16 %v1532_v44, %v1531_v57  ;;  %v1643_v49 = vld [vmem:[#allocation9 + $0xc8] sm:$0xff]  ;;  %v1646_v53 = vld [vmem:[#allocation9 + $0xe0] sm:$0xff]  ;;  %v1648_v38 = vld [vmem:[#allocation9 + $0xf0] sm:$0xff] }
 0x1ee   :  { %1384 = vmatprep.mubr.f32.mxu1 %v1082_v41  ;;  %v1075_v18 = vsel %vm325_vm6, %v1064_v14, %v1074_v15  ;;  %v1650_v6 = vld [vmem:[#allocation9 + $0x100] sm:$0xff] }
 0x1ef   :  { %1385 = vmatmul.mubr.f32.vlgmr.msra.gmra.mrb[0].mxu1 %v1075_v18 }
 0x1f0   :  { %2200 = vmatprep.mubr.msk.f32.mxu1 %vm2519_vm7, %v2520_v20  ;;  %2325 = vmatpush3.bf16.msra.mxu0 %v2011_v19 }
 0x1f1   :  { %2350 = vmatprep.subr.bf16.mxu0 %v2518_v32 }
 0x1f3   :  { %2166 = vmatmul.mubr.f32.vlgmr.msra.gmra.mrb[2].mxu0 %v908_v8 }
 0x1f4   :  { %2235 = vmatprep.mubr.msk.f32.mxu0 %vm2519_vm7, %v2520_v20  ;;  %v3063_v20 = vand.u32 127, %v249_v0  ;;  %v1517_v0 = vld [vmem:[#allocation9 + $0x8] sm:$0xff] }
 0x1f5   :  { %v2327_v50 = vpack.c.bf16 %v1518_v48, %v1517_v0  ;;  %v1642_v0 = vld [vmem:[#allocation9 + $0xc0] sm:$0xff] }
 0x1f6   :  { %vm1462_vm8 = vcmp.ge.s32.totalorder %v3063_v20, 64  ;;  %vm1463_vm9 = vcmp.lt.s32.totalorder %v3063_v20, 96  ;;  %vm1727_vm11 = vcmp.lt.s32.totalorder %v3063_v20, 64  ;;  %vm1726_vm12 = vcmp.lt.s32.totalorder %v3063_v20, 32 }
 0x1f7   :  { %vm1464_vm10 = vmand %vm1462_vm8, %vm1463_vm9  ;;  %2328 = vmatpush3.bf16.msra.mxu1 %v2327_v50  ;;  %v1644_v50 = vld [vmem:[#allocation9 + $0xd0] sm:$0xff] }
 0x1f8   :  { %2329 = vmatprep.subr.bf16.mxu1 %v2518_v32  ;;  %v2363_v51 = vpack.c.bf16 %v1644_v50, %v1643_v49 }
 0x1fb   :  { %2331 = vmatpush3.bf16.msra.mxu1 %v2330_v52  ;;  %v1645_v52 = vld [vmem:[#allocation9 + $0xd8] sm:$0xff] }
 0x1fc   :  { %2332 = vmatprep.subr.bf16.mxu1 %v2518_v32  ;;  %v2366_v54 = vpack.c.bf16 %v1646_v53, %v1645_v52 }
 0x1ff   :  { %2334 = vmatpush3.bf16.msra.mxu1 %v2333_v12  ;;  %v1647_v12 = vld [vmem:[#allocation9 + $0xe8] sm:$0xff] }
 0x200   :  { %2335 = vmatprep.subr.bf16.mxu1 %v2518_v32  ;;  %v2369_v4 = vpack.c.bf16 %v1648_v38, %v1647_v12 }
 0x203   :  { %2337 = vmatpush3.bf16.msra.mxu1 %v2336_v5  ;;  %v1649_v5 = vld [vmem:[#allocation9 + $0xf8] sm:$0xff] }
 0x204   :  { %2338 = vmatprep.subr.bf16.mxu1 %v2518_v32  ;;  %v2372_v10 = vpack.c.bf16 %v1650_v6, %v1649_v5 }
 0x207   :  { %2340 = vmatpush3.bf16.msra.mxu1 %v2339_v11 }
 0x208   :  { %2341 = vmatprep.subr.bf16.mxu1 %v2518_v32 }
 0x20b   :  { %2343 = vmatpush3.bf16.msra.mxu1 %v2342_v55 }
 0x20c   :  { %2344 = vmatprep.subr.bf16.mxu1 %v2518_v32 }
 0x20f   :  { %2346 = vmatpush3.bf16.msra.mxu1 %v2345_v16 }
 0x210   :  { %2347 = vmatprep.subr.bf16.mxu1 %v2518_v32 }
 0x213   :  { %2349 = vmatpush3.bf16.msra.mxu1 %v2348_v2 }
 0x2a6   :  { %v2044_v22 = vpop.f32.mrb[0].mxu0 }
 0x2a7   :  { %v2045_v25 = vpop.f32.mrb[1].mxu0 }
 0x2a8   :  { %v2046_v27 = vadd.f32 %v2045_v25, %v2044_v22 }
 0x2aa   :  { %v1317_v23 = vadd.f32 %v2046_v27, %v1807_v28 }
 0x2c2   :  { %v2079_v30 = vpop.f32.mrb[0].mxu1 }
 0x2c3   :  { %v2080_v39 = vpop.f32.mrb[1].mxu1 }
 0x2c4   :  { %v2081_v42 = vadd.f32 %v2080_v39, %v2079_v30 }
 0x2c6   :  { %v1387_v31 = vadd.f32 %v2081_v42, %v1317_v23  ;;  %v1456_v60 = vpop.f32.mrb[2].mxu0  ;;  %v1808_v42 = vld [vmem:[#allocation9 + $0x1] ss:$0 sm:$0xff] }
 0x2c7   :  { %v2167_v61 = vpop.f32.mrb[3].mxu0 }
 0x2c8   :  { %v1457_v33 = vadd.f32 %v1456_v60, %v1387_v31  ;;  %v1809_v60 = vld [vmem:[#allocation9 + $0x2] ss:$0 sm:$0xff] }
 0x2ca   :  { %v1466_v34 = vsub.f32 0.0, %v1457_v33 }
 0x2cc   :  { %v1467_v62 = vmul.f32 1.442695, %v1466_v34 }
 0x2ce   :  { %2392 = vpow2.f32 %v1467_v62  ;;  %v1635_v62 = vld [vmem:[#allocation9 + $0x88] sm:$0xff] }
 0x2cf   :  { %2394 = vtanh.f32 %v1457_v33 }
 0x2d8   :  { %v2393_v35 = vpop.eup %2392 }
 0x2d9   :  { %v1469_v13 = vadd.f32 1.0, %v2393_v35  ;;  %v2395_v24 = vpop.eup %2394  ;;  %v1636_v35 = vld [vmem:[#allocation9 + $0x90] sm:$0xff] }
 0x2db   :  { %2396 = vrcp.f32 %v1469_v13  ;;  %v2351_v13 = vpack.c.bf16 %v1636_v35, %v1635_v62 }
 0x2dd   :  { %2352 = vmatpush3.bf16.msra.mxu0 %v2351_v13 }
 0x2de   :  { %2353 = vmatprep.subr.bf16.mxu0 %v2518_v32 }
 0x2e5   :  { %v2397_v59 = vpop.eup %2396 }
 0x2e6   :  { %v1472_v36 = vsel %vm1464_vm10, %v2395_v24, %v2397_v59  ;;  %v1637_v24 = vld [vmem:[#allocation9 + $0x98] sm:$0xff]  ;;  %v1638_v59 = vld [vmem:[#allocation9 + $0xa0] sm:$0xff] }
 0x2e7   :  { %1475 = vrot.lane.b32.xlu1 %v1472_v36, %s2521_s4  ;;  %1473 = vrot.lane.b32.xlu0 %v1472_v36, %s2522_s26  ;;  %v1477_v46 = vmul.f32 %v1472_v36, %v908_v8  ;;  %v2354_v36 = vpack.c.bf16 %v1638_v59, %v1637_v24 }
 0x2e9   :  { %2355 = vmatpush3.bf16.msra.mxu0 %v2354_v36 }
 0x2ea   :  { %2356 = vmatprep.subr.bf16.mxu0 %v2518_v32 }
 0x359   :  { %v1476_v37 = vpop.permute.xlu1 %1475  ;;  %v1474_v45 = vpop.permute.xlu0 %1473 }
 0x35a   :  { %v1478_v29 = vmul.f32 %v1476_v37, %v1474_v45  ;;  %v1639_v37 = vld [vmem:[#allocation9 + $0xa8] sm:$0xff] }
 0x35c   :  { %v3067_v47 = vadd.f32 %v1478_v29, %v1477_v46  ;;  %v1641_v29 = vld [vmem:[#allocation9 + $0xb8] sm:$0xff] }
 0x35d   :  { %v2360_v48 = vpack.c.bf16 %v1642_v0, %v1641_v29 }
 0x35e   :  { %1480 = vrot.lane.b32.xlu1 %v3067_v47, %s2521_s4 }
 0x3d0   :  { %v1481_v21 = vpop.permute.xlu1 %1480 }
 0x3d1   :  { %2398 = vtanh.f32 %v1481_v21 }
 0x3db   :  { %v2399_v58 = vpop.eup %2398 }
 0x3dc   :  { %v3077_v26 = vmul.f32 %v2399_v58, %v1474_v45  ;;  %v1640_v45 = vld [vmem:[#allocation9 + $0xb0] sm:$0xff] }
 0x3dd   :  { %v2357_v46 = vpack.c.bf16 %v1640_v45, %v1639_v37 }
 0x3de   :  { %v1486_v3 = vrot.slane %v3077_v26, 4 }
 0x3df   :  { %2358 = vmatpush3.bf16.msra.mxu0 %v2357_v46 }
 0x3e0   :  { %v1487_v63 = vadd.f32 %v1486_v3, %v3077_v26  ;;  %2359 = vmatprep.subr.bf16.mxu0 %v2518_v32 }
 0x3e2   :  { %v1488_v40 = vrot.slane %v1487_v63, 2 }
 0x3e3   :  { %2361 = vmatpush3.bf16.msra.mxu0 %v2360_v48 }
 0x3e4   :  { %v1489_v1 = vadd.f32 %v1488_v40, %v1487_v63  ;;  %2362 = vmatprep.subr.bf16.mxu0 %v2518_v32 }
 0x3e6   :  { %v1490_v41 = vrot.slane %v1489_v1, 1 }
 0x3e7   :  { %2364 = vmatpush3.bf16.msra.mxu0 %v2363_v51 }
 0x3e8   :  { %v1491_v14 = vadd.f32 %v1490_v41, %v1489_v1  ;;  %2365 = vmatprep.subr.bf16.mxu0 %v2518_v32 }
 0x3ea   :  { %v1493_v9 = vmul.f32 0.125, %v1491_v14 }
 0x3eb   :  { %2367 = vmatpush3.bf16.msra.mxu0 %v2366_v54 }
 0x3ec   :  { %v1494_v15 = vsub.f32 %v3077_v26, %v1493_v9  ;;  %2368 = vmatprep.subr.bf16.mxu0 %v2518_v32 }
 0x3ee   :  { %v1495_v18 = vmul.f32 %v1494_v15, %v1494_v15 }
 0x3ef   :  { %2370 = vmatpush3.bf16.msra.mxu0 %v2369_v4 }
 0x3f0   :  { %v1496_v19 = vrot.slane %v1495_v18, 4  ;;  %2371 = vmatprep.subr.bf16.mxu0 %v2518_v32 }
 0x3f2   :  { %v1497_v8 = vadd.f32 %v1496_v19, %v1495_v18  ;;  %v1811_v19 = vld [vmem:[#allocation9 + $0x4] ss:$0 sm:$0xff] }
 0x3f3   :  { %2373 = vmatpush3.bf16.msra.mxu0 %v2372_v10 }
 0x3f4   :  { %v1498_v22 = vrot.slane %v1497_v8, 2 }
 0x3f6   :  { %v1499_v25 = vadd.f32 %v1498_v22, %v1497_v8 }
 0x3f8   :  { %v1500_v27 = vrot.slane %v1499_v25, 1 }
 0x3fa   :  { %v1501_v28 = vadd.f32 %v1500_v27, %v1499_v25  ;;  %v1812_v27 = vld [vmem:[#allocation9 + $0x5] ss:$0 sm:$0xff] }
 0x3fc   :  { %v1502_v30 = vmul.f32 0.125, %v1501_v28 }
 0x3fe   :  { %v1503_v39 = vadd.f32 1e-05, %v1502_v30 }
 0x400   :  { %2400 = vrsqrt.f32 %v1503_v39 }
 0x40a   :  { %v2401_v23 = vpop.eup %2400 }
 0x40b   :  { %v1505_v31 = vmul.f32 %v2401_v23, %v1494_v15  ;;  %v1810_v15 = vld [vmem:[#allocation9 + $0x3] ss:$0 sm:$0xff] }
 0x40d   :  { %v1510_v33 = vmul.f32 %v1808_v42, %v1505_v31 }
 0x40f   :  { %v1515_v61 = vadd.f32 %v1809_v60, %v1510_v33 }
 0x411   :  { %v1516_v34 = vmax.f32 %v1515_v61, 0.0 }
 0x413   :  { %2201 = vmatmul.mubr.f32.vlgmr.msra.gmra.mrb[2].mxu1 %v1516_v34 }
 0x4e6   :  { %v1599_v11 = vpop.f32.mrb[2].mxu1 }
 0x4e7   :  { %v1605_v7 = vrot.slane %v1599_v11, 4  ;;  %v2202_v17 = vpop.f32.mrb[3].mxu1 }
 0x4e9   :  { %v1606_v55 = vadd.f32 %v1605_v7, %v1599_v11 }
 0x4eb   :  { %v1607_v43 = vrot.slane %v1606_v55, 2 }
 0x4ed   :  { %v1608_v56 = vadd.f32 %v1607_v43, %v1606_v55 }
 0x4ef   :  { %v1609_v16 = vrot.slane %v1608_v56, 1 }
 0x4f1   :  { %v1610_v57 = vadd.f32 %v1609_v16, %v1608_v56 }
 0x4f3   :  { %v1611_v44 = vmul.f32 0.125, %v1610_v57 }
 0x4f5   :  { %v1612_v2 = vsub.f32 %v1599_v11, %v1611_v44 }
 0x4f7   :  { %v1613_v21 = vmul.f32 %v1612_v2, %v1612_v2 }
 0x4f9   :  { %v1614_v58 = vrot.slane %v1613_v21, 4 }
 0x4fb   :  { %v1615_v3 = vadd.f32 %v1614_v58, %v1613_v21 }
 0x4fd   :  { %v1616_v63 = vrot.slane %v1615_v3, 2 }
 0x4ff   :  { %v1617_v40 = vadd.f32 %v1616_v63, %v1615_v3 }
 0x501   :  { %v1618_v1 = vrot.slane %v1617_v40, 1 }
 0x503   :  { %v1619_v41 = vadd.f32 %v1618_v1, %v1617_v40 }
 0x505   :  { %v1620_v14 = vmul.f32 0.125, %v1619_v41 }
 0x507   :  { %v1621_v32 = vadd.f32 1e-05, %v1620_v14 }
 0x509   :  { %2402 = vrsqrt.f32 %v1621_v32 }
 0x513   :  { %v2403_v9 = vpop.eup %2402 }
 0x514   :  { %v1623_v18 = vmul.f32 %v2403_v9, %v1612_v2 }
 0x516   :  { %v1628_v8 = vmul.f32 %v1810_v15, %v1623_v18 }
 0x518   :  { %v1633_v22 = vadd.f32 %v1811_v19, %v1628_v8 }
 0x51a   :  { %v1634_v25 = vmax.f32 %v1633_v22, 0.0 }
 0x51c   :  { %2236 = vmatmul.mubr.f32.vlgmr.msra.gmra.mrb[4].mxu0 %v1634_v25 }
 0x5ef   :  { %v1722_v28 = vpop.f32.mrb[4].mxu0 }
 0x5f0   :  { %v1723_v30 = vadd.f32 %v1812_v27, %v1722_v28  ;;  %v2237_v39 = vpop.f32.mrb[5].mxu0 }
 0x5f2   :  { %v1728_v23 = vsel %vm1727_vm11, %v3067_v47, %v1723_v30 }
 0x5f3   :  { %v1729_v42 = vsel %vm1726_vm12, %v3077_v26, %v1728_v23 }
 0x5f4   :  { %1730 = vst [vmem:[#allocation10] sm:$0xff] %v1729_v42 }
 0x5f5   :  { %2491 = shalt.err (!%p2488_p3)
}
 0x5f6   :  { %s2492_s7 = scalar_lea.hbm %s3110_s5, 128 }
 0x5f7   :  { %p2493_p4 = scmp.ne.s32.totalorder %s3110_s5, %s2492_s7  ;;  %p2496_p5 = scmp.lt.u32.totalorder %s2492_s7, %s3110_s5 }
 0x5f9   :  { %p2498_p6 = pnand %p2496_p5, %p2493_p4 }
 0x5fb   :  { %2501 = shalt.err (!%p2498_p6)
}
 0x5fc   :  { %1740 = dma.vmem_to_hbm [thread:$0]  %s1738_s28, 128, %s3110_s5, [#allocation4]  }
 0x5fd   :  { %2508 = dma.done.wait [#allocation4], 128  }
 0x5fe   :  { %2509 = vsyncadd [#allocation4], 4294967168 }
 0x5ff   :  { %1744 = vsyncpa [#allocation3], 1 }
 0x600   :  { %1745 = vsyncpa [#allocation8], 1 }
 0x601   :  { %1746 = vsyncpa [#allocation4], 1 }
 0x602   :  { %1747 = vsyncpa [#allocation5], 1 }

</bundles_post_ra>
